<compile_context>
chip_gen: v5e
topology: v5e:2x2
jax: 0.10.0
libtpu: 0.0.40
codegen_flags: <defaults>
</compile_context>

<pallas_src>
import numpy as np
import jax
import jax.numpy as jnp
from jax.experimental import pallas as pl
from jax.experimental.pallas import tpu as pltpu

# ---------------------------- hyper-parameters ------------------------------
T = 3                   # message-passing iterations (static, unrolled)
EMBED_DIM = 32
REG_HIDDEN = 16
NODE_DIM = 2
EDGE_DIM = 4
W_SCALE = 0.01
PAD_FEAT = 8            # zero-pad tiny node/edge feature dims (exact math)

NODES_PER_GRAPH = 16
EDGES_PER_GRAPH = 2 * NODES_PER_GRAPH          # ring graph, both directions
GRAPHS_PER_GROUP = 8                           # graphs per grid step
NUM_GROUPS = 2                                 # grid size ("parallel" axis)
BATCH = NUM_GROUPS * GRAPHS_PER_GROUP          # total graphs = 16
NODES_PER_GROUP = GRAPHS_PER_GROUP * NODES_PER_GRAPH   # 128 node rows / block
EDGES_PER_GROUP = GRAPHS_PER_GROUP * EDGES_PER_GRAPH   # 256 edge rows / block


# ------------------------------ Pallas kernel -------------------------------
def s2v_dqn_kernel(x_ref, ea_ref, src_ref, tgt_t_ref, sel_ref,
                   w_n2l_ref, w_e2l_ref, pconv_t2_ref, t1_ref,
                   h1_ref, h2_ref, q_ref):
    f32 = jnp.float32
    bf16 = jnp.bfloat16

    # ---- hoisted loop-invariant loads ----
    # One-hot glue stays bf16 (exact 0/1) and is fed straight to the MXU.
    src = src_ref[...]            # (E_g, N_g) one-hot of edge_index[0] (local)
    tgt_t = tgt_t_ref[...]        # (N_g, E_g) one-hot^T of edge_index[1] (local)
    pconv_t2 = pconv_t2_ref[...]  # (D, 2D) = [p_node_conv | trans_node_2]
    t1 = t1_ref[...]
    h1 = h1_ref[...]              # (2D, H)
    h1_act = h1[:EMBED_DIM]       # acts on action embedding
    h1_pool = h1[EMBED_DIM:]      # acts on graph-pool embedding

    # node / edge input projections (f32)
    x = jnp.maximum(
        jnp.dot(x_ref[...], w_n2l_ref[...], preferred_element_type=f32), 0.0)
    ea = jnp.dot(ea_ref[...], w_e2l_ref[...], preferred_element_type=f32)

    # T rounds of structure2vec message passing (static unroll)
    for _ in range(T):
        # fused: [x @ p_node_conv | x @ trans_node_2] in one 64-lane matmul
        xw = jnp.dot(x, pconv_t2, preferred_element_type=f32)      # (N_g, 2D)
        msg = xw[:, :EMBED_DIM].astype(bf16)                       # x @ p_node_conv
        xt2 = xw[:, EMBED_DIM:]                                    # x @ trans_node_2
        n2e = jnp.dot(src, msg, preferred_element_type=f32)        # gather src nodes
        edge_rep = jnp.maximum(n2e + ea, 0.0).astype(bf16)
        e2n = jnp.dot(tgt_t, edge_rep, preferred_element_type=f32)  # scatter_add to dst
        x = jnp.maximum(
            jnp.dot(e2n, t1, preferred_element_type=f32) + xt2, 0.0)

    # ---- fused readout: [action one-hots ; batch-pool rows] @ x, one matmul ----
    readout = jnp.dot(sel_ref[...], x.astype(bf16), preferred_element_type=f32)
    act_embed = readout[:GRAPHS_PER_GROUP]       # (B_g, D) = x[data.y]
    y_pot = readout[GRAPHS_PER_GROUP:]           # (B_g, D) = scatter_add over data.batch

    # cat((act, pool), -1) @ h1  ==  act @ h1[:D] + pool @ h1[D:]  (no scratch)
    hidden = jnp.maximum(
        jnp.dot(act_embed, h1_act, preferred_element_type=f32)
        + jnp.dot(y_pot, h1_pool, preferred_element_type=f32), 0.0)
    q_ref[...] = jnp.dot(hidden, h2_ref[...], preferred_element_type=f32)


def s2v_dqn_forward(x_pad, ea_pad, src_oh, tgt_oh_t, sel, params):
    wmap = lambda g: (0, 0)   # weights: same (resident) block every grid step
    grid_spec = pltpu.PrefetchScalarGridSpec(
        num_scalar_prefetch=0,
        grid=(NUM_GROUPS,),
        in_specs=[
            pl.BlockSpec((NODES_PER_GROUP, PAD_FEAT), lambda g: (g, 0)),          # nodes x
            pl.BlockSpec((EDGES_PER_GROUP, PAD_FEAT), lambda g: (g, 0)),          # edge_attr
            pl.BlockSpec((EDGES_PER_GROUP, NODES_PER_GROUP), lambda g: (g, 0)),   # src one-hot (block-diag)
            pl.BlockSpec((NODES_PER_GROUP, EDGES_PER_GROUP), lambda g: (g, 0)),   # tgt one-hot^T (block-diag)
            pl.BlockSpec((2 * GRAPHS_PER_GROUP, NODES_PER_GROUP), lambda g: (g, 0)),  # fused readout select
            pl.BlockSpec((PAD_FEAT, EMBED_DIM), wmap),            # w_n2l
            pl.BlockSpec((PAD_FEAT, EMBED_DIM), wmap),            # w_e2l
            pl.BlockSpec((EMBED_DIM, 2 * EMBED_DIM), wmap),       # [p_node_conv | trans_node_2]
            pl.BlockSpec((EMBED_DIM, EMBED_DIM), wmap),           # trans_node_1
            pl.BlockSpec((2 * EMBED_DIM, REG_HIDDEN), wmap),      # h1
            pl.BlockSpec((REG_HIDDEN, 1), wmap),                  # h2
        ],
        out_specs=pl.BlockSpec((GRAPHS_PER_GROUP, 1), lambda g: (g, 0)),
    )
    return pl.pallas_call(
        s2v_dqn_kernel,
        out_shape=jax.ShapeDtypeStruct((BATCH, 1), jnp.float32),
        grid_spec=grid_spec,
        compiler_params=pltpu.CompilerParams(
            dimension_semantics=("parallel",),       # 2 groups -> 2 TCs on v7x
            vmem_limit_bytes=4 * 1024 * 1024),
    )(x_pad, ea_pad, src_oh, tgt_oh_t, sel,
      params["w_n2l"], params["w_e2l"], params["pconv_t2"],
      params["trans_node_1"], params["h1"], params["h2"])


# ----------------------- host-side float64 reference ------------------------
def reference_np(x, ea, edge_index, batch, y, p):
    x = np.maximum(x @ p["w_n2l"], 0.0)
    ea = ea @ p["w_e2l"]
    n = x.shape[0]
    for _ in range(T):
        msg = x @ p["p_node_conv"]
        n2e = msg[edge_index[0]]
        edge_rep = np.maximum(n2e + ea, 0.0)
        e2n = np.zeros((n, EMBED_DIM), dtype=np.float64)
        np.add.at(e2n, edge_index[1], edge_rep)
        x = np.maximum(e2n @ p["trans_node_1"] + x @ p["trans_node_2"], 0.0)
    y_pot = np.zeros((BATCH, EMBED_DIM), dtype=np.float64)
    np.add.at(y_pot, batch, x)
    act = x[y]
    es = np.concatenate([act, y_pot], axis=-1)
    hidden = np.maximum(es @ p["h1"], 0.0)
    return hidden @ p["h2"]


# ---------------------------------- main -------------------------------------
if __name__ == "__main__":
    key = jax.random.PRNGKey(0)
    ks = jax.random.split(key, 10)

    N = BATCH * NODES_PER_GRAPH                    # 256 nodes total
    # ring graph per batch element, both edge directions -> 512 directed edges
    edges = []
    for b in range(BATCH):
        off = b * NODES_PER_GRAPH
        for i in range(NODES_PER_GRAPH):
            u, v = off + i, off + (i + 1) % NODES_PER_GRAPH
            edges.append((u, v))
            edges.append((v, u))
    edge_index_np = np.array(edges, dtype=np.int32).T            # (2, E)
    E = edge_index_np.shape[1]
    assert E == NUM_GROUPS * EDGES_PER_GROUP

    batch_vec = np.repeat(np.arange(BATCH), NODES_PER_GRAPH).astype(np.int32)   # (N,)
    # one action node per graph (deterministic), always inside its own graph
    y_sel = (np.arange(BATCH) * NODES_PER_GRAPH
             + (np.arange(BATCH) * 3) % NODES_PER_GRAPH).astype(np.int32)       # (BATCH,)

    # input features
    x = jax.random.normal(ks[0], (N, NODE_DIM), dtype=jnp.float32)
    ea = jax.random.normal(ks[1], (E, EDGE_DIM), dtype=jnp.float32)

    # deterministic parameter init: normal(0, w_scale), matching __init__
    w_n2l = W_SCALE * jax.random.normal(ks[2], (NODE_DIM, EMBED_DIM), jnp.float32)
    w_e2l = W_SCALE * jax.random.normal(ks[3], (EDGE_DIM, EMBED_DIM), jnp.float32)
    p_node_conv = W_SCALE * jax.random.normal(ks[4], (EMBED_DIM, EMBED_DIM), jnp.float32)
    trans_node_1 = W_SCALE * jax.random.normal(ks[5], (EMBED_DIM, EMBED_DIM), jnp.float32)
    trans_node_2 = W_SCALE * jax.random.normal(ks[6], (EMBED_DIM, EMBED_DIM), jnp.float32)
    h1 = W_SCALE * jax.random.normal(ks[7], (2 * EMBED_DIM, REG_HIDDEN), jnp.float32)
    h2 = W_SCALE * jax.random.normal(ks[8], (REG_HIDDEN, 1), jnp.float32)

    # zero-pad tiny contraction dims (exact, avoids K=2 / K=4 matmuls)
    x_pad = jnp.zeros((N, PAD_FEAT), jnp.float32).at[:, :NODE_DIM].set(x)
    ea_pad = jnp.zeros((E, PAD_FEAT), jnp.float32).at[:, :EDGE_DIM].set(ea)
    w_n2l_pad = jnp.zeros((PAD_FEAT, EMBED_DIM), jnp.float32).at[:NODE_DIM].set(w_n2l)
    w_e2l_pad = jnp.zeros((PAD_FEAT, EMBED_DIM), jnp.float32).at[:EDGE_DIM].set(w_e2l)
    # fused [p_node_conv | trans_node_2] -> one 64-lane matmul per T step
    pconv_t2 = jnp.concatenate([p_node_conv, trans_node_2], axis=1)   # (D, 2D)

    # ---- block-diagonal, per-group LOCAL one-hot glue (bf16: 0/1 exact) ----
    edge_group = np.repeat(np.arange(NUM_GROUPS), EDGES_PER_GROUP)
    src_local = edge_index_np[0] - edge_group * NODES_PER_GROUP
    tgt_local = edge_index_np[1] - edge_group * NODES_PER_GROUP
    src_oh = jnp.asarray(np.eye(NODES_PER_GROUP, dtype=np.float32)[src_local],
                         dtype=jnp.bfloat16)                                   # (E, N_g)
    tgt_oh_t = jnp.asarray(
        np.eye(NODES_PER_GROUP, dtype=np.float32)[tgt_local]
        .reshape(NUM_GROUPS, EDGES_PER_GROUP, NODES_PER_GROUP)
        .transpose(0, 2, 1)
        .reshape(NUM_GROUPS * NODES_PER_GROUP, EDGES_PER_GROUP),
        dtype=jnp.bfloat16)                                                    # (N, E_g)

    # fused readout select matrix: per group, rows = [action one-hots ; pool rows]
    graph_group = np.arange(BATCH) // GRAPHS_PER_GROUP
    act_local = y_sel - graph_group * NODES_PER_GROUP
    act_oh = np.eye(NODES_PER_GROUP, dtype=np.float32)[act_local].reshape(
        NUM_GROUPS, GRAPHS_PER_GROUP, NODES_PER_GROUP)                          # (G, B_g, N_g)
    pool_rows = np.eye(GRAPHS_PER_GROUP, dtype=np.float32)[
        np.repeat(np.arange(GRAPHS_PER_GROUP), NODES_PER_GRAPH)].T              # (B_g, N_g)
    pool_oh = np.broadcast_to(pool_rows,
                              (NUM_GROUPS, GRAPHS_PER_GROUP, NODES_PER_GROUP))
    sel = jnp.asarray(
        np.concatenate([act_oh, pool_oh], axis=1).reshape(
            NUM_GROUPS * 2 * GRAPHS_PER_GROUP, NODES_PER_GROUP),
        dtype=jnp.bfloat16)                                                     # (2*G*B_g, N_g)

    params = {
        "w_n2l": w_n2l_pad, "w_e2l": w_e2l_pad, "pconv_t2": pconv_t2,
        "trans_node_1": trans_node_1, "h1": h1, "h2": h2,
    }

    q_pred = s2v_dqn_forward(x_pad, ea_pad, src_oh, tgt_oh_t, sel, params)
    q_pred = np.asarray(jax.block_until_ready(q_pred), dtype=np.float64)

    # strengthened check: host-side float64 reference, relative tolerance
    ref_params = {
        "w_n2l": np.asarray(w_n2l, np.float64), "w_e2l": np.asarray(w_e2l, np.float64),
        "p_node_conv": np.asarray(p_node_conv, np.float64),
        "trans_node_1": np.asarray(trans_node_1, np.float64),
        "trans_node_2": np.asarray(trans_node_2, np.float64),
        "h1": np.asarray(h1, np.float64), "h2": np.asarray(h2, np.float64),
    }
    q_ref = reference_np(np.asarray(x, np.float64), np.asarray(ea, np.float64),
                         edge_index_np, batch_vec, y_sel, ref_params)
    assert q_pred.shape == (BATCH, 1)
    scale = float(np.max(np.abs(q_ref)))
    assert scale > 1e-12, "degenerate reference output"
    rel_err = float(np.max(np.abs(q_pred - q_ref))) / scale
    assert rel_err < 3e-2, f"relative error too large: {rel_err}"
    print("KERNEL_OK")
</pallas_src>

<mosaic_0001>
module attributes {stable_mosaic.version = 11 : i64} {
  func.func @s2v_dqn_kernel(%arg0: i32, %arg1: memref<128x8xf32, #tpu.memory_space<vmem>>, %arg2: memref<256x8xf32, #tpu.memory_space<vmem>>, %arg3: memref<256x128xbf16, #tpu.memory_space<vmem>>, %arg4: memref<128x256xbf16, #tpu.memory_space<vmem>>, %arg5: memref<16x128xbf16, #tpu.memory_space<vmem>>, %arg6: memref<8x32xf32, #tpu.memory_space<vmem>>, %arg7: memref<8x32xf32, #tpu.memory_space<vmem>>, %arg8: memref<32x64xf32, #tpu.memory_space<vmem>>, %arg9: memref<32x32xf32, #tpu.memory_space<vmem>>, %arg10: memref<64x16xf32, #tpu.memory_space<vmem>>, %arg11: memref<16x1xf32, #tpu.memory_space<vmem>>, %arg12: memref<8x1xf32, #tpu.memory_space<vmem>>) attributes {dimension_semantics = [#tpu.dimension_semantics<parallel>], iteration_bounds = array<i64: 2>, scalar_prefetch = 0 : i64, scratch_operands = 0 : i64, tpu.core_type = #tpu.core_type<tc>, window_params = [{transform_indices = @transform_0, window_bounds = array<i64: 128, 8>}, {transform_indices = @transform_1, window_bounds = array<i64: 256, 8>}, {transform_indices = @transform_2, window_bounds = array<i64: 256, 128>}, {transform_indices = @transform_3, window_bounds = array<i64: 128, 256>}, {transform_indices = @transform_4, window_bounds = array<i64: 16, 128>}, {pipeline_mode = #tpu.pipeline_mode<synchronous>, transform_indices = @transform_5, window_bounds = array<i64: 8, 32>}, {pipeline_mode = #tpu.pipeline_mode<synchronous>, transform_indices = @transform_6, window_bounds = array<i64: 8, 32>}, {pipeline_mode = #tpu.pipeline_mode<synchronous>, transform_indices = @transform_7, window_bounds = array<i64: 32, 64>}, {pipeline_mode = #tpu.pipeline_mode<synchronous>, transform_indices = @transform_8, window_bounds = array<i64: 32, 32>}, {pipeline_mode = #tpu.pipeline_mode<synchronous>, transform_indices = @transform_9, window_bounds = array<i64: 64, 16>}, {pipeline_mode = #tpu.pipeline_mode<synchronous>, transform_indices = @transform_10, window_bounds = array<i64: 16, 1>}, {transform_indices = @transform_11, window_bounds = array<i64: 8, 1>}]} {
    %c0 = arith.constant 0 : index
    %c0_0 = arith.constant 0 : index
    %0 = vector.load %arg3[%c0, %c0_0] : memref<256x128xbf16, #tpu.memory_space<vmem>>, vector<256x128xbf16>
    %c0_1 = arith.constant 0 : index
    %c0_2 = arith.constant 0 : index
    %1 = vector.load %arg4[%c0_1, %c0_2] : memref<128x256xbf16, #tpu.memory_space<vmem>>, vector<128x256xbf16>
    %c0_3 = arith.constant 0 : index
    %c0_4 = arith.constant 0 : index
    %2 = vector.load %arg8[%c0_3, %c0_4] : memref<32x64xf32, #tpu.memory_space<vmem>>, vector<32x64xf32>
    %c0_5 = arith.constant 0 : index
    %c0_6 = arith.constant 0 : index
    %3 = vector.load %arg9[%c0_5, %c0_6] : memref<32x32xf32, #tpu.memory_space<vmem>>, vector<32x32xf32>
    %c0_7 = arith.constant 0 : index
    %c0_8 = arith.constant 0 : index
    %4 = vector.load %arg10[%c0_7, %c0_8] : memref<64x16xf32, #tpu.memory_space<vmem>>, vector<64x16xf32>
    %5 = vector.extract_strided_slice %4 {offsets = [0, 0], sizes = [32, 16], strides = [1, 1]} : vector<64x16xf32> to vector<32x16xf32>
    %6 = vector.extract_strided_slice %4 {offsets = [32, 0], sizes = [32, 16], strides = [1, 1]} : vector<64x16xf32> to vector<32x16xf32>
    %c0_9 = arith.constant 0 : index
    %c0_10 = arith.constant 0 : index
    %7 = vector.load %arg1[%c0_9, %c0_10] : memref<128x8xf32, #tpu.memory_space<vmem>>, vector<128x8xf32>
    %c0_11 = arith.constant 0 : index
    %c0_12 = arith.constant 0 : index
    %8 = vector.load %arg6[%c0_11, %c0_12] : memref<8x32xf32, #tpu.memory_space<vmem>>, vector<8x32xf32>
    %cst = arith.constant dense<0.000000e+00> : vector<128x32xf32>
    %9 = tpu.matmul %7, %8, %cst {dimension_numbers = #tpu.dot_dimension_numbers<[1], [0], [0], [1], [0, 0, 1, 1], [], []>} : vector<128x8xf32>, vector<8x32xf32>, vector<128x32xf32> -> vector<128x32xf32>
    %cst_13 = arith.constant 0.000000e+00 : f32
    %10 = vector.broadcast %cst_13 : f32 to vector<128x32xf32>
    %11 = arith.maximumf %9, %10 : vector<128x32xf32>
    %c0_14 = arith.constant 0 : index
    %c0_15 = arith.constant 0 : index
    %12 = vector.load %arg2[%c0_14, %c0_15] : memref<256x8xf32, #tpu.memory_space<vmem>>, vector<256x8xf32>
    %c0_16 = arith.constant 0 : index
    %c0_17 = arith.constant 0 : index
    %13 = vector.load %arg7[%c0_16, %c0_17] : memref<8x32xf32, #tpu.memory_space<vmem>>, vector<8x32xf32>
    %cst_18 = arith.constant dense<0.000000e+00> : vector<256x32xf32>
    %14 = tpu.matmul %12, %13, %cst_18 {dimension_numbers = #tpu.dot_dimension_numbers<[1], [0], [0], [1], [0, 0, 1, 1], [], []>} : vector<256x8xf32>, vector<8x32xf32>, vector<256x32xf32> -> vector<256x32xf32>
    %cst_19 = arith.constant dense<0.000000e+00> : vector<128x64xf32>
    %15 = tpu.matmul %11, %2, %cst_19 {dimension_numbers = #tpu.dot_dimension_numbers<[1], [0], [0], [1], [0, 0, 1, 1], [], []>} : vector<128x32xf32>, vector<32x64xf32>, vector<128x64xf32> -> vector<128x64xf32>
    %16 = vector.extract_strided_slice %15 {offsets = [0, 0], sizes = [128, 32], strides = [1, 1]} : vector<128x64xf32> to vector<128x32xf32>
    %17 = arith.truncf %16 : vector<128x32xf32> to vector<128x32xbf16>
    %18 = vector.extract_strided_slice %15 {offsets = [0, 32], sizes = [128, 32], strides = [1, 1]} : vector<128x64xf32> to vector<128x32xf32>
    %cst_20 = arith.constant dense<0.000000e+00> : vector<256x32xf32>
    %19 = tpu.matmul %0, %17, %cst_20 {dimension_numbers = #tpu.dot_dimension_numbers<[1], [0], [0], [1], [0, 0, 1, 1], [], []>} : vector<256x128xbf16>, vector<128x32xbf16>, vector<256x32xf32> -> vector<256x32xf32>
    %20 = arith.addf %19, %14 : vector<256x32xf32>
    %cst_21 = arith.constant 0.000000e+00 : f32
    %21 = vector.broadcast %cst_21 : f32 to vector<256x32xf32>
    %22 = arith.maximumf %20, %21 : vector<256x32xf32>
    %23 = arith.truncf %22 : vector<256x32xf32> to vector<256x32xbf16>
    %cst_22 = arith.constant dense<0.000000e+00> : vector<128x32xf32>
    %24 = tpu.matmul %1, %23, %cst_22 {dimension_numbers = #tpu.dot_dimension_numbers<[1], [0], [0], [1], [0, 0, 1, 1], [], []>} : vector<128x256xbf16>, vector<256x32xbf16>, vector<128x32xf32> -> vector<128x32xf32>
    %cst_23 = arith.constant dense<0.000000e+00> : vector<128x32xf32>
    %25 = tpu.matmul %24, %3, %cst_23 {dimension_numbers = #tpu.dot_dimension_numbers<[1], [0], [0], [1], [0, 0, 1, 1], [], []>} : vector<128x32xf32>, vector<32x32xf32>, vector<128x32xf32> -> vector<128x32xf32>
    %26 = arith.addf %25, %18 : vector<128x32xf32>
    %cst_24 = arith.constant 0.000000e+00 : f32
    %27 = vector.broadcast %cst_24 : f32 to vector<128x32xf32>
    %28 = arith.maximumf %26, %27 : vector<128x32xf32>
    %cst_25 = arith.constant dense<0.000000e+00> : vector<128x64xf32>
    %29 = tpu.matmul %28, %2, %cst_25 {dimension_numbers = #tpu.dot_dimension_numbers<[1], [0], [0], [1], [0, 0, 1, 1], [], []>} : vector<128x32xf32>, vector<32x64xf32>, vector<128x64xf32> -> vector<128x64xf32>
    %30 = vector.extract_strided_slice %29 {offsets = [0, 0], sizes = [128, 32], strides = [1, 1]} : vector<128x64xf32> to vector<128x32xf32>
    %31 = arith.truncf %30 : vector<128x32xf32> to vector<128x32xbf16>
    %32 = vector.extract_strided_slice %29 {offsets = [0, 32], sizes = [128, 32], strides = [1, 1]} : vector<128x64xf32> to vector<128x32xf32>
    %cst_26 = arith.constant dense<0.000000e+00> : vector<256x32xf32>
    %33 = tpu.matmul %0, %31, %cst_26 {dimension_numbers = #tpu.dot_dimension_numbers<[1], [0], [0], [1], [0, 0, 1, 1], [], []>} : vector<256x128xbf16>, vector<128x32xbf16>, vector<256x32xf32> -> vector<256x32xf32>
    %34 = arith.addf %33, %14 : vector<256x32xf32>
    %cst_27 = arith.constant 0.000000e+00 : f32
    %35 = vector.broadcast %cst_27 : f32 to vector<256x32xf32>
    %36 = arith.maximumf %34, %35 : vector<256x32xf32>
    %37 = arith.truncf %36 : vector<256x32xf32> to vector<256x32xbf16>
    %cst_28 = arith.constant dense<0.000000e+00> : vector<128x32xf32>
    %38 = tpu.matmul %1, %37, %cst_28 {dimension_numbers = #tpu.dot_dimension_numbers<[1], [0], [0], [1], [0, 0, 1, 1], [], []>} : vector<128x256xbf16>, vector<256x32xbf16>, vector<128x32xf32> -> vector<128x32xf32>
    %cst_29 = arith.constant dense<0.000000e+00> : vector<128x32xf32>
    %39 = tpu.matmul %38, %3, %cst_29 {dimension_numbers = #tpu.dot_dimension_numbers<[1], [0], [0], [1], [0, 0, 1, 1], [], []>} : vector<128x32xf32>, vector<32x32xf32>, vector<128x32xf32> -> vector<128x32xf32>
    %40 = arith.addf %39, %32 : vector<128x32xf32>
    %cst_30 = arith.constant 0.000000e+00 : f32
    %41 = vector.broadcast %cst_30 : f32 to vector<128x32xf32>
    %42 = arith.maximumf %40, %41 : vector<128x32xf32>
    %cst_31 = arith.constant dense<0.000000e+00> : vector<128x64xf32>
    %43 = tpu.matmul %42, %2, %cst_31 {dimension_numbers = #tpu.dot_dimension_numbers<[1], [0], [0], [1], [0, 0, 1, 1], [], []>} : vector<128x32xf32>, vector<32x64xf32>, vector<128x64xf32> -> vector<128x64xf32>
    %44 = vector.extract_strided_slice %43 {offsets = [0, 0], sizes = [128, 32], strides = [1, 1]} : vector<128x64xf32> to vector<128x32xf32>
    %45 = arith.truncf %44 : vector<128x32xf32> to vector<128x32xbf16>
    %46 = vector.extract_strided_slice %43 {offsets = [0, 32], sizes = [128, 32], strides = [1, 1]} : vector<128x64xf32> to vector<128x32xf32>
    %cst_32 = arith.constant dense<0.000000e+00> : vector<256x32xf32>
    %47 = tpu.matmul %0, %45, %cst_32 {dimension_numbers = #tpu.dot_dimension_numbers<[1], [0], [0], [1], [0, 0, 1, 1], [], []>} : vector<256x128xbf16>, vector<128x32xbf16>, vector<256x32xf32> -> vector<256x32xf32>
    %48 = arith.addf %47, %14 : vector<256x32xf32>
    %cst_33 = arith.constant 0.000000e+00 : f32
    %49 = vector.broadcast %cst_33 : f32 to vector<256x32xf32>
    %50 = arith.maximumf %48, %49 : vector<256x32xf32>
    %51 = arith.truncf %50 : vector<256x32xf32> to vector<256x32xbf16>
    %cst_34 = arith.constant dense<0.000000e+00> : vector<128x32xf32>
    %52 = tpu.matmul %1, %51, %cst_34 {dimension_numbers = #tpu.dot_dimension_numbers<[1], [0], [0], [1], [0, 0, 1, 1], [], []>} : vector<128x256xbf16>, vector<256x32xbf16>, vector<128x32xf32> -> vector<128x32xf32>
    %cst_35 = arith.constant dense<0.000000e+00> : vector<128x32xf32>
    %53 = tpu.matmul %52, %3, %cst_35 {dimension_numbers = #tpu.dot_dimension_numbers<[1], [0], [0], [1], [0, 0, 1, 1], [], []>} : vector<128x32xf32>, vector<32x32xf32>, vector<128x32xf32> -> vector<128x32xf32>
    %54 = arith.addf %53, %46 : vector<128x32xf32>
    %cst_36 = arith.constant 0.000000e+00 : f32
    %55 = vector.broadcast %cst_36 : f32 to vector<128x32xf32>
    %56 = arith.maximumf %54, %55 : vector<128x32xf32>
    %c0_37 = arith.constant 0 : index
    %c0_38 = arith.constant 0 : index
    %57 = vector.load %arg5[%c0_37, %c0_38] : memref<16x128xbf16, #tpu.memory_space<vmem>>, vector<16x128xbf16>
    %58 = arith.truncf %56 : vector<128x32xf32> to vector<128x32xbf16>
    %cst_39 = arith.constant dense<0.000000e+00> : vector<16x32xf32>
    %59 = tpu.matmul %57, %58, %cst_39 {dimension_numbers = #tpu.dot_dimension_numbers<[1], [0], [0], [1], [0, 0, 1, 1], [], []>} : vector<16x128xbf16>, vector<128x32xbf16>, vector<16x32xf32> -> vector<16x32xf32>
    %60 = vector.extract_strided_slice %59 {offsets = [0, 0], sizes = [8, 32], strides = [1, 1]} : vector<16x32xf32> to vector<8x32xf32>
    %61 = vector.extract_strided_slice %59 {offsets = [8, 0], sizes = [8, 32], strides = [1, 1]} : vector<16x32xf32> to vector<8x32xf32>
    %cst_40 = arith.constant dense<0.000000e+00> : vector<8x16xf32>
    %62 = tpu.matmul %60, %5, %cst_40 {dimension_numbers = #tpu.dot_dimension_numbers<[1], [0], [0], [1], [0, 0, 1, 1], [], []>} : vector<8x32xf32>, vector<32x16xf32>, vector<8x16xf32> -> vector<8x16xf32>
    %cst_41 = arith.constant dense<0.000000e+00> : vector<8x16xf32>
    %63 = tpu.matmul %61, %6, %cst_41 {dimension_numbers = #tpu.dot_dimension_numbers<[1], [0], [0], [1], [0, 0, 1, 1], [], []>} : vector<8x32xf32>, vector<32x16xf32>, vector<8x16xf32> -> vector<8x16xf32>
    %64 = arith.addf %62, %63 : vector<8x16xf32>
    %cst_42 = arith.constant 0.000000e+00 : f32
    %65 = vector.broadcast %cst_42 : f32 to vector<8x16xf32>
    %66 = arith.maximumf %64, %65 : vector<8x16xf32>
    %c0_43 = arith.constant 0 : index
    %c0_44 = arith.constant 0 : index
    %67 = vector.load %arg11[%c0_43, %c0_44] : memref<16x1xf32, #tpu.memory_space<vmem>>, vector<16x1xf32>
    %cst_45 = arith.constant dense<0.000000e+00> : vector<8x1xf32>
    %68 = tpu.matmul %66, %67, %cst_45 {dimension_numbers = #tpu.dot_dimension_numbers<[1], [0], [0], [1], [0, 0, 1, 1], [], []>} : vector<8x16xf32>, vector<16x1xf32>, vector<8x1xf32> -> vector<8x1xf32>
    %c0_46 = arith.constant 0 : index
    %c0_47 = arith.constant 0 : index
    %69 = vector.load %arg12[%c0_46, %c0_47] : memref<8x1xf32, #tpu.memory_space<vmem>>, vector<8x1xf32>
    tpu.vector_store %arg12[%c0_46, %c0_47], %68 {strides = array<i32>} : memref<8x1xf32, #tpu.memory_space<vmem>>, vector<8x1xf32>,
    return
  }
  func.func @transform_0(%arg0: i32) -> (i32, i32) {
    %c0_i32 = arith.constant 0 : i32
    %c0_i32_0 = arith.constant 0 : i32
    return %arg0, %c0_i32 : i32, i32
  }
  func.func @transform_1(%arg0: i32) -> (i32, i32) {
    %c0_i32 = arith.constant 0 : i32
    %c0_i32_0 = arith.constant 0 : i32
    return %arg0, %c0_i32 : i32, i32
  }
  func.func @transform_2(%arg0: i32) -> (i32, i32) {
    %c0_i32 = arith.constant 0 : i32
    %c0_i32_0 = arith.constant 0 : i32
    return %arg0, %c0_i32 : i32, i32
  }
  func.func @transform_3(%arg0: i32) -> (i32, i32) {
    %c0_i32 = arith.constant 0 : i32
    %c0_i32_0 = arith.constant 0 : i32
    return %arg0, %c0_i32 : i32, i32
  }
  func.func @transform_4(%arg0: i32) -> (i32, i32) {
    %c0_i32 = arith.constant 0 : i32
    %c0_i32_0 = arith.constant 0 : i32
    return %arg0, %c0_i32 : i32, i32
  }
  func.func @transform_5(%arg0: i32) -> (i32, i32) {
    %c0_i32 = arith.constant 0 : i32
    %c0_i32_0 = arith.constant 0 : i32
    %c0_i32_1 = arith.constant 0 : i32
    return %c0_i32, %c0_i32_0 : i32, i32
  }
  func.func @transform_6(%arg0: i32) -> (i32, i32) {
    %c0_i32 = arith.constant 0 : i32
    %c0_i32_0 = arith.constant 0 : i32
    %c0_i32_1 = arith.constant 0 : i32
    return %c0_i32, %c0_i32_0 : i32, i32
  }
  func.func @transform_7(%arg0: i32) -> (i32, i32) {
    %c0_i32 = arith.constant 0 : i32
    %c0_i32_0 = arith.constant 0 : i32
    %c0_i32_1 = arith.constant 0 : i32
    return %c0_i32, %c0_i32_0 : i32, i32
  }
  func.func @transform_8(%arg0: i32) -> (i32, i32) {
    %c0_i32 = arith.constant 0 : i32
    %c0_i32_0 = arith.constant 0 : i32
    %c0_i32_1 = arith.constant 0 : i32
    return %c0_i32, %c0_i32_0 : i32, i32
  }
  func.func @transform_9(%arg0: i32) -> (i32, i32) {
    %c0_i32 = arith.constant 0 : i32
    %c0_i32_0 = arith.constant 0 : i32
    %c0_i32_1 = arith.constant 0 : i32
    return %c0_i32, %c0_i32_0 : i32, i32
  }
  func.func @transform_10(%arg0: i32) -> (i32, i32) {
    %c0_i32 = arith.constant 0 : i32
    %c0_i32_0 = arith.constant 0 : i32
    %c0_i32_1 = arith.constant 0 : i32
    return %c0_i32, %c0_i32_0 : i32, i32
  }
  func.func @transform_11(%arg0: i32) -> (i32, i32) {
    %c0_i32 = arith.constant 0 : i32
    %c0_i32_0 = arith.constant 0 : i32
    return %arg0, %c0_i32 : i32, i32
  }
}

</mosaic_0001>

<bundles_post_ra>
// kernel: tpu_custom_call.1
= control target key start
LH: loop header
LB: loop body
LE: loop exit
PB: predicated region body
PF: predicated region fallthrough
CT: control target
= control target key end

     0   :  { %s3403_s17 = smov 0   ;;  %s4243_s0 = inlined_call_operand.vmem [shape: f32[256,8], index: 0, kind: input, shape index: {}]   ;;  %s4244_s1 = inlined_call_operand.vmem [shape: f32[512,8], index: 1, kind: input, shape index: {}]   ;;  %s4245_s2 = inlined_call_operand.vmem [shape: bf16[512,128], index: 2, kind: input, shape index: {}]   ;;  %s4246_s3 = inlined_call_operand.vmem [shape: bf16[256,256], index: 3, kind: input, shape index: {}]   ;;  %s4247_s4 = inlined_call_operand.vmem [shape: bf16[32,128], index: 4, kind: input, shape index: {}]   ;;  %s4248_s5 = inlined_call_operand.vmem [shape: f32[8,32], index: 5, kind: input, shape index: {}]   ;;  %s4249_s6 = inlined_call_operand.vmem [shape: f32[8,32], index: 6, kind: input, shape index: {}]   ;;  %s4250_s7 = inlined_call_operand.vmem [shape: f32[32,64], index: 7, kind: input, shape index: {}]   ;;  %s4251_s8 = inlined_call_operand.vmem [shape: f32[32,32], index: 8, kind: input, shape index: {}]   ;;  %s4252_s9 = inlined_call_operand.vmem [shape: f32[64,16], index: 9, kind: input, shape index: {}]   ;;  %s4253_s10 = inlined_call_operand.vmem [shape: f32[16,1], index: 10, kind: input, shape index: {}]   ;;  %s4254_s11 = inlined_call_operand.vmem [shape: f32[16,1], index: 11, kind: output, shape index: {}]  }
   0x1 LB: > { %s3409_s18 = sadd.s32 4294967295, %s3340_s17   ;;  %p2965_p0 = scmp.ge.s32.totalorder %s3340_s17, 1  ;;  %s3340_s17 = sphi %s3403_s17, %s21_s17  }
   0x2   : > { %p383_p1 = scmp.lt.s32.totalorder %s3340_s17, 3 }
   0x4   : > { %p384_p2 = pnand %p2965_p0, %p383_p1 }
   0x6   : > { %387 = sbr.rel (%p384_p2) target bundleno = 3593 (0xe09), region = 64 }
   0xb   : > { %v558_v0 = vld [vmem:[%s4248_s5] sm:$0xff]  ;;  %s2966_s23 = sshll.u32 %s3409_s18, 4  ;;  %s2968_s24 = sshll.u32 %s3409_s18, 5  ;;  %vm559_vm0 = vcmask 64512   ;;  %v529_v34 = vld [vmem:[%s4250_s7 + $0x18] sm:$0xff]  ;;  %v528_v35 = vld [vmem:[%s4250_s7 + $0x10] sm:$0xff] }
   0xc   : > { %v721_v1 = vld [vmem:[%s4249_s6] sm:$0xff]  ;;  %623 = vmatpush.msra.mxu0 %v558_v0  ;;  %p444_p3 = scmp.lt.s32.totalorder %s2966_s23, 31  ;;  %p450_p4 = scmp.lt.s32.totalorder %s2968_s24, 63  ;;  %3293 = vmatpush.msra.mxu2 %v529_v34  ;;  %v527_v37 = vld [vmem:[%s4250_s7 + $0x8] sm:$0xff]  ;;  %vm931_vm1 = vcmask 261120   ;;  %vm2834_vm2 = vcmask 130048  }
   0xd   : > { %833 = vmatpush.msra.mxu1 %v721_v1  ;;  %v526_v40 = vld [vmem:[%s4250_s7] sm:$0xff]  ;;  %s3342_s27 = smov 96   ;;  %s2975_s22 = sshll.u32 %s3409_s18, 1  ;;  %vm2858_vm3 = vcmask 7168  }
   0xe   : > { %s4369_s23 = smov (!%p444_p3, %s2966_s23), 31  ;;  %s4371_s24 = smov (!%p450_p4, %s2968_s24), 63  ;;  %3294 = vmatpush.msra.mxu2 %v528_v35 }
   0xf   : > { %s2967_s25 = sshll.u32 %s4369_s23, 3  ;;  %s2969_s29 = sshll.u32 %s4371_s24, 3  ;;  %992 = vmatpush.msrb.mxu1 %v529_v34 }
  0x10   : > { %s3431_s28 = scalar_lea.vmem %s4243_s0, %s2967_s25  ;;  %s3439_s13 = scalar_lea.vmem %s4244_s1, %s2969_s29  ;;  %3295 = vmatpush.msra.mxu2 %v527_v37 }
  0x11   : > { %v542_v2 = vld [vmem:[%s3431_s28] sm:$0xff]  ;;  %v543_v4 = vld [vmem:[%s3431_s28 + $0x8] sm:$0xff]  ;;  %v544_v6 = vld [vmem:[%s3431_s28 + $0x10] sm:$0xff]  ;;  %993 = vmatpush.msrb.mxu1 %v528_v35  ;;  %s3764_s14 = scalar_lea.vmem %s4246_s3, %s2967_s25  ;;  %p469_p5 = scmp.lt.s32.totalorder %s2975_s22, 3 }
  0x12   : > { %2978 = vmatmul.msk.f32.vlgmr.msra.gmra.mxu0 %vm559_vm0, %v542_v2  ;;  %v689_v3 = vld [vmem:[%s3439_s13] sm:$0xff]  ;;  %v690_v5 = vld [vmem:[%s3439_s13 + $0x8] sm:$0xff]  ;;  %v691_v7 = vld [vmem:[%s3439_s13 + $0x10] sm:$0xff]  ;;  %3296 = vmatpush.msra.mxu2 %v526_v40  ;;  %p474_p6 = scmp.lt.s32.totalorder %s3409_s18, 1 }
  0x13   : > { %2994 = vmatmul.msk.f32.vlgmr.msra.gmra.mxu1 %vm559_vm0, %v689_v3  ;;  %v545_v8 = vld [vmem:[%s3431_s28 + $0x18] sm:$0xff]  ;;  %v546_v10 = vld [vmem:[%s3431_s28 + $0x20] sm:$0xff]  ;;  %v547_v12 = vld [vmem:[%s3431_s28 + $0x28] sm:$0xff]  ;;  %s4373_s22 = smov (!%p469_p5, %s2975_s22), 3 }
  0x14   : > { %v692_v9 = vld [vmem:[%s3439_s13 + $0x18] sm:$0xff]  ;;  %v693_v11 = vld [vmem:[%s3439_s13 + $0x20] sm:$0xff]  ;;  %v694_v13 = vld [vmem:[%s3439_s13 + $0x28] sm:$0xff]  ;;  %994 = vmatpush.msrb.mxu1 %v527_v37  ;;  %s2976_s26 = sshll.u32 %s4373_s22, 2  ;;  %s4375_s18 = smov (!%p474_p6, %s3409_s18), 1 }
  0x15   : > { %v548_v14 = vld [vmem:[%s3431_s28 + $0x30] sm:$0xff]  ;;  %v549_v16 = vld [vmem:[%s3431_s28 + $0x38] sm:$0xff]  ;;  %v550_v18 = vld [vmem:[%s3431_s28 + $0x40] sm:$0xff]  ;;  %s472_s30 = scalar_lea.vmem %s4247_s4, %s2976_s26  ;;  %s2977_s22 = sshll.u32 %s4375_s18, 3 }
  0x16   : > { %v695_v15 = vld [vmem:[%s3439_s13 + $0x30] sm:$0xff]  ;;  %v696_v17 = vld [vmem:[%s3439_s13 + $0x38] sm:$0xff]  ;;  %v697_v19 = vld [vmem:[%s3439_s13 + $0x40] sm:$0xff]  ;;  %995 = vmatpush.msrb.mxu1 %v526_v40  ;;  %s477_s29 = scalar_lea.vmem %s4254_s11, %s2977_s22 }
  0x17   : > { %v551_v20 = vld [vmem:[%s3431_s28 + $0x48] sm:$0xff]  ;;  %v552_v22 = vld [vmem:[%s3431_s28 + $0x50] sm:$0xff]  ;;  %v553_v24 = vld [vmem:[%s3431_s28 + $0x58] sm:$0xff] }
  0x18   : > { %v698_v21 = vld [vmem:[%s3439_s13 + $0x48] sm:$0xff]  ;;  %v699_v23 = vld [vmem:[%s3439_s13 + $0x50] sm:$0xff]  ;;  %v700_v25 = vld [vmem:[%s3439_s13 + $0x58] sm:$0xff]  ;;  %1717 = vmatpush.msra.mxu1 %v529_v34 }
  0x19   : > { %v554_v26 = vld [vmem:[%s3431_s28 + $0x60] sm:$0xff]  ;;  %v555_v28 = vld [vmem:[%s3431_s28 + $0x68] sm:$0xff]  ;;  %v556_v30 = vld [vmem:[%s3431_s28 + $0x70] sm:$0xff] }
  0x1a   : > { %2979 = vmatmul.msk.f32.gmra.mxu0 %vm559_vm0, %v543_v4  ;;  %v701_v27 = vld [vmem:[%s3439_s13 + $0x60] sm:$0xff]  ;;  %v702_v29 = vld [vmem:[%s3439_s13 + $0x68] sm:$0xff]  ;;  %v703_v31 = vld [vmem:[%s3439_s13 + $0x70] sm:$0xff]  ;;  %1718 = vmatpush.msra.mxu1 %v528_v35 }
  0x1b   : > { %2995 = vmatmul.msk.f32.gmra.mxu1 %vm559_vm0, %v690_v5  ;;  %v557_v32 = vld [vmem:[%s3431_s28 + $0x78] sm:$0xff]  ;;  %v705_v39 = vld [vmem:[%s3439_s13 + $0x80] sm:$0xff]  ;;  %v706_v43 = vld [vmem:[%s3439_s13 + $0x88] sm:$0xff]  ;;  %s2971_s28 = sshll.u32 %s4371_s24, 2 }
  0x1c   : > { %v704_v33 = vld [vmem:[%s3439_s13 + $0x78] sm:$0xff]  ;;  %1719 = vmatpush.msra.mxu1 %v527_v37  ;;  %v707_v46 = vld [vmem:[%s3439_s13 + $0x90] sm:$0xff]  ;;  %v709_v53 = vld [vmem:[%s3439_s13 + $0xa0] sm:$0xff]  ;;  %s3654_s12 = scalar_lea.vmem %s4245_s2, %s2971_s28 }
  0x1d   : > { %v708_v49 = vld [vmem:[%s3439_s13 + $0x98] sm:$0xff]  ;;  %v710_v57 = vld [vmem:[%s3439_s13 + $0xa8] sm:$0xff]  ;;  %v711_v61 = vld [vmem:[%s3439_s13 + $0xb0] sm:$0xff] }
  0x1e   : > { %1720 = vmatpush.msra.mxu1 %v526_v40  ;;  %v712_v1 = vld [vmem:[%s3439_s13 + $0xb8] sm:$0xff]  ;;  %v713_v5 = vld [vmem:[%s3439_s13 + $0xc0] sm:$0xff] }
  0x22   : > { %2980 = vmatmul.msk.f32.gmra.mxu0 %vm559_vm0, %v544_v6 }
  0x23   : > { %2996 = vmatmul.msk.f32.gmra.mxu1 %vm559_vm0, %v691_v7 }
  0x2a   : > { %2981 = vmatmul.msk.f32.gmra.mxu0 %vm559_vm0, %v545_v8 }
  0x2b   : > { %2997 = vmatmul.msk.f32.gmra.mxu1 %vm559_vm0, %v692_v9  ;;  %v714_v9 = vld [vmem:[%s3439_s13 + $0xc8] sm:$0xff] }
  0x32   : > { %2982 = vmatmul.msk.f32.gmra.mxu0 %vm559_vm0, %v546_v10 }
  0x33   : > { %2998 = vmatmul.msk.f32.gmra.mxu1 %vm559_vm0, %v693_v11 }
  0x3a   : > { %2983 = vmatmul.msk.f32.gmra.mxu0 %vm559_vm0, %v547_v12 }
  0x3b   : > { %2999 = vmatmul.msk.f32.gmra.mxu1 %vm559_vm0, %v694_v13  ;;  %v715_v13 = vld [vmem:[%s3439_s13 + $0xd0] sm:$0xff] }
  0x42   : > { %2984 = vmatmul.msk.f32.gmra.mxu0 %vm559_vm0, %v548_v14 }
  0x43   : > { %3000 = vmatmul.msk.f32.gmra.mxu1 %vm559_vm0, %v695_v15 }
  0x4a   : > { %2985 = vmatmul.msk.f32.gmra.mxu0 %vm559_vm0, %v549_v16 }
  0x4b   : > { %3001 = vmatmul.msk.f32.gmra.mxu1 %vm559_vm0, %v696_v17  ;;  %v716_v17 = vld [vmem:[%s3439_s13 + $0xd8] sm:$0xff] }
  0x52   : > { %2986 = vmatmul.msk.f32.gmra.mxu0 %vm559_vm0, %v550_v18 }
  0x53   : > { %3002 = vmatmul.msk.f32.gmra.mxu1 %vm559_vm0, %v697_v19 }
  0x5a   : > { %2987 = vmatmul.msk.f32.gmra.mxu0 %vm559_vm0, %v551_v20 }
  0x5b   : > { %3003 = vmatmul.msk.f32.gmra.mxu1 %vm559_vm0, %v698_v21  ;;  %v717_v21 = vld [vmem:[%s3439_s13 + $0xe0] sm:$0xff] }
  0x62   : > { %2988 = vmatmul.msk.f32.gmra.mxu0 %vm559_vm0, %v552_v22 }
  0x63   : > { %3004 = vmatmul.msk.f32.gmra.mxu1 %vm559_vm0, %v699_v23 }
  0x6a   : > { %2989 = vmatmul.msk.f32.gmra.mxu0 %vm559_vm0, %v553_v24 }
  0x6b   : > { %3005 = vmatmul.msk.f32.gmra.mxu1 %vm559_vm0, %v700_v25  ;;  %v718_v25 = vld [vmem:[%s3439_s13 + $0xe8] sm:$0xff] }
  0x72   : > { %2990 = vmatmul.msk.f32.gmra.mxu0 %vm559_vm0, %v554_v26 }
  0x73   : > { %3006 = vmatmul.msk.f32.gmra.mxu1 %vm559_vm0, %v701_v27 }
  0x7a   : > { %2991 = vmatmul.msk.f32.gmra.mxu0 %vm559_vm0, %v555_v28 }
  0x7b   : > { %3007 = vmatmul.msk.f32.gmra.mxu1 %vm559_vm0, %v702_v29  ;;  %v719_v29 = vld [vmem:[%s3439_s13 + $0xf0] sm:$0xff] }
  0x82   : > { %2992 = vmatmul.msk.f32.gmra.mxu0 %vm559_vm0, %v556_v30 }
  0x83   : > { %3008 = vmatmul.msk.f32.gmra.mxu1 %vm559_vm0, %v703_v31 }
  0x8a   : > { %2993 = vmatmul.msk.f32.gmra.mxu0 %vm559_vm0, %v557_v32 }
  0x8b   : > { %3009 = vmatmul.msk.f32.gmra.mxu1 %vm559_vm0, %v704_v33  ;;  %v720_v33 = vld [vmem:[%s3439_s13 + $0xf8] sm:$0xff] }
  0x8f   : > { %v3509_v36 = vpop.f32.mrf.mxu0 }
  0x90   : > { %v3514_v38 = vpop.f32.mrf.mxu1  ;;  %v673_v35 = vmax.f32 %v3509_v36, 0.0 }
  0x93   : > { %3010 = vmatmul.msk.f32.gmra.mxu1 %vm559_vm0, %v705_v39 }
  0x97   : > { %v3521_v41 = vpop.f32.mrf.mxu0 }
  0x98   : > { %v3523_v42 = vpop.f32.mrf.mxu1  ;;  %v674_v39 = vmax.f32 %v3521_v41, 0.0 }
  0x9b   : > { %3011 = vmatmul.msk.f32.gmra.mxu1 %vm559_vm0, %v706_v43 }
  0x9f   : > { %v3527_v44 = vpop.f32.mrf.mxu0 }
  0xa0   : > { %v3529_v45 = vpop.f32.mrf.mxu1  ;;  %v675_v43 = vmax.f32 %v3527_v44, 0.0 }
  0xa3   : > { %3012 = vmatmul.msk.f32.gmra.mxu1 %vm559_vm0, %v707_v46 }
  0xa7   : > { %v3533_v47 = vpop.f32.mrf.mxu0 }
  0xa8   : > { %v3535_v48 = vpop.f32.mrf.mxu1 }
  0xab   : > { %3013 = vmatmul.msk.f32.gmra.mxu1 %vm559_vm0, %v708_v49  ;;  %v676_v49 = vmax.f32 %v3533_v47, 0.0 }
  0xaf   : > { %v637_v50 = vpop.f32.mrf.mxu0 }
  0xb0   : > { %v677_v51 = vmax.f32 %v637_v50, 0.0  ;;  %v3539_v52 = vpop.f32.mrf.mxu1 }
  0xb2   : > { %3030 = vmatmul.msk.f32.vlgmr.msra.gmra.mxu2 %vm931_vm1, %v677_v51 }
  0xb3   : > { %3014 = vmatmul.msk.f32.gmra.mxu1 %vm559_vm0, %v709_v53 }
  0xb7   : > { %v640_v54 = vpop.f32.mrf.mxu0 }
  0xb8   : > { %v678_v55 = vmax.f32 %v640_v54, 0.0  ;;  %v3544_v56 = vpop.f32.mrf.mxu1 }
  0xb9   : > { %4307 = vst [vmem:[#allocation2_spill] sm:$0xff] %v3544_v56 }
  0xba   : > { %3031 = vmatmul.msk.f32.gmra.mxu2 %vm931_vm1, %v678_v55 }
  0xbb   : > { %3015 = vmatmul.msk.f32.gmra.mxu1 %vm559_vm0, %v710_v57 }
  0xbf   : > { %v643_v58 = vpop.f32.mrf.mxu0 }
  0xc0   : > { %v679_v59 = vmax.f32 %v643_v58, 0.0  ;;  %v3549_v60 = vpop.f32.mrf.mxu1 }
  0xc1   : > { %4308 = vst [vmem:[#allocation3_spill] sm:$0xff] %v3549_v60 }
  0xc2   : > { %3032 = vmatmul.msk.f32.gmra.mxu2 %vm931_vm1, %v679_v59 }
  0xc3   : > { %3016 = vmatmul.msk.f32.gmra.mxu1 %vm559_vm0, %v711_v61 }
  0xc7   : > { %v646_v62 = vpop.f32.mrf.mxu0 }
  0xc8   : > { %v680_v63 = vmax.f32 %v646_v62, 0.0  ;;  %v3554_v0 = vpop.f32.mrf.mxu1 }
  0xc9   : > { %4309 = vst [vmem:[#allocation4_spill] sm:$0xff] %v3554_v0 }
  0xca   : > { %3033 = vmatmul.msk.f32.gmra.mxu2 %vm931_vm1, %v680_v63 }
  0xcb   : > { %3017 = vmatmul.msk.f32.gmra.mxu1 %vm559_vm0, %v712_v1 }
  0xcf   : > { %v649_v2 = vpop.f32.mrf.mxu0 }
  0xd0   : > { %v681_v3 = vmax.f32 %v649_v2, 0.0  ;;  %v3559_v4 = vpop.f32.mrf.mxu1 }
  0xd1   : > { %4310 = vst [vmem:[#allocation5_spill] sm:$0xff] %v3559_v4 }
  0xd2   : > { %3034 = vmatmul.msk.f32.gmra.mxu2 %vm931_vm1, %v681_v3 }
  0xd3   : > { %3018 = vmatmul.msk.f32.gmra.mxu1 %vm559_vm0, %v713_v5 }
  0xd7   : > { %v652_v6 = vpop.f32.mrf.mxu0 }
  0xd8   : > { %v682_v7 = vmax.f32 %v652_v6, 0.0  ;;  %v3564_v8 = vpop.f32.mrf.mxu1 }
  0xd9   : > { %4311 = vst [vmem:[#allocation6_spill] sm:$0xff] %v3564_v8 }
  0xda   : > { %3035 = vmatmul.msk.f32.gmra.mxu2 %vm931_vm1, %v682_v7 }
  0xdb   : > { %3019 = vmatmul.msk.f32.gmra.mxu1 %vm559_vm0, %v714_v9 }
  0xdf   : > { %v655_v10 = vpop.f32.mrf.mxu0 }
  0xe0   : > { %v683_v11 = vmax.f32 %v655_v10, 0.0  ;;  %v3569_v12 = vpop.f32.mrf.mxu1 }
  0xe2   : > { %3036 = vmatmul.msk.f32.gmra.mxu2 %vm931_vm1, %v683_v11 }
  0xe3   : > { %3020 = vmatmul.msk.f32.gmra.mxu1 %vm559_vm0, %v715_v13 }
  0xe7   : > { %v658_v14 = vpop.f32.mrf.mxu0 }
  0xe8   : > { %v684_v15 = vmax.f32 %v658_v14, 0.0  ;;  %v3574_v16 = vpop.f32.mrf.mxu1 }
  0xea   : > { %3037 = vmatmul.msk.f32.gmra.mxu2 %vm931_vm1, %v684_v15 }
  0xeb   : > { %3021 = vmatmul.msk.f32.gmra.mxu1 %vm559_vm0, %v716_v17 }
  0xef   : > { %v661_v18 = vpop.f32.mrf.mxu0 }
  0xf0   : > { %v685_v19 = vmax.f32 %v661_v18, 0.0  ;;  %v3579_v20 = vpop.f32.mrf.mxu1 }
  0xf2   : > { %3038 = vmatmul.msk.f32.gmra.mxu2 %vm931_vm1, %v685_v19 }
  0xf3   : > { %3022 = vmatmul.msk.f32.gmra.mxu1 %vm559_vm0, %v717_v21 }
  0xf7   : > { %v664_v22 = vpop.f32.mrf.mxu0 }
  0xf8   : > { %v686_v23 = vmax.f32 %v664_v22, 0.0  ;;  %v3584_v24 = vpop.f32.mrf.mxu1 }
  0xf9   : > { %4312 = vst [vmem:[#allocation7_spill] sm:$0xff] %v3584_v24 }
  0xfa   : > { %3039 = vmatmul.msk.f32.gmra.mxu2 %vm931_vm1, %v686_v23 }
  0xfb   : > { %3023 = vmatmul.msk.f32.gmra.mxu1 %vm559_vm0, %v718_v25 }
  0xff   : > { %v667_v26 = vpop.f32.mrf.mxu0 }
 0x100   : > { %v687_v27 = vmax.f32 %v667_v26, 0.0  ;;  %v3589_v28 = vpop.f32.mrf.mxu1 }
 0x102   : > { %3040 = vmatmul.msk.f32.gmra.mxu2 %vm931_vm1, %v687_v27 }
 0x103   : > { %3024 = vmatmul.msk.f32.gmra.mxu1 %vm559_vm0, %v719_v29  ;;  %v3657_v29 = vld [vmem:[%s3654_s12] sm:$0xff] }
 0x107   : > { %v670_v30 = vpop.f32.mrf.mxu0 }
 0x108   : > { %v688_v31 = vmax.f32 %v670_v30, 0.0  ;;  %v3594_v32 = vpop.f32.mrf.mxu1  ;;  %v3665_v30 = vld [vmem:[%s3654_s12 + $0x8] sm:$0xff] }
 0x10a   : > { %3041 = vmatmul.msk.f32.gmra.mxu2 %vm931_vm1, %v688_v31  ;;  %v3670_v31 = vld [vmem:[%s3654_s12 + $0x10] sm:$0xff] }
 0x10b   : > { %3025 = vmatmul.msk.f32.gmra.mxu1 %vm559_vm0, %v720_v33  ;;  %v3674_v33 = vld [vmem:[%s3654_s12 + $0x18] sm:$0xff] }
 0x110   : > { %v3599_v34 = vpop.f32.mrf.mxu1 }
 0x111   : > { %4313 = vst [vmem:[#allocation8_spill] sm:$0xff] %v3599_v34 }
 0x113   : > { %3026 = vmatmul.msk.f32.vlgmr.msrb.gmra.mxu1 %vm931_vm1, %v673_v35  ;;  %v3678_v35 = vld [vmem:[%s3654_s12 + $0x20] sm:$0xff] }
 0x118   : > { %v3603_v37 = vpop.f32.mrf.mxu1 }
 0x11b   : > { %3027 = vmatmul.msk.f32.gmra.mxu1 %vm931_vm1, %v674_v39  ;;  %v3682_v39 = vld [vmem:[%s3654_s12 + $0x28] sm:$0xff] }
 0x120   : > { %v3607_v40 = vpop.f32.mrf.mxu1 }
 0x123   : > { %3028 = vmatmul.msk.f32.gmra.mxu1 %vm931_vm1, %v675_v43  ;;  %v3686_v43 = vld [vmem:[%s3654_s12 + $0x30] sm:$0xff] }
 0x128   : > { %v3611_v46 = vpop.f32.mrf.mxu1 }
 0x12b   : > { %3029 = vmatmul.msk.f32.gmra.mxu1 %vm931_vm1, %v676_v49  ;;  %v3690_v49 = vld [vmem:[%s3654_s12 + $0x38] sm:$0xff] }
 0x130   : > { %v3615_v36 = vpop.f32.mrf.mxu1 }
 0x135   : > { %v1009_v50 = vpop.f32.mrf.mxu2 }
 0x136   : > { %1488 = vrot.lane.b32.xlu2 %v1009_v50, %s3342_s27 }
 0x138   : > { %v3618_v41 = vpop.f32.mrf.mxu1 }
 0x13d   : > { %v1012_v51 = vpop.f32.mrf.mxu2 }
 0x13e   : > { %1490 = vrot.lane.b32.xlu2 %v1012_v51, %s3342_s27  ;;  %v1047_v23 = vpack.c.bf16 %v1012_v51, %v1009_v50  ;;  %v3694_v50 = vld [vmem:[%s3654_s12 + $0x40] sm:$0xff] }
 0x140   : > { %v3621_v44 = vpop.f32.mrf.mxu1 }
 0x145   : > { %v1015_v53 = vpop.f32.mrf.mxu2 }
 0x148   : > { %v3623_v54 = vpop.f32.mrf.mxu1 }
 0x14d   : > { %v1018_v55 = vpop.f32.mrf.mxu2 }
 0x14e   : > { %v1048_v21 = vpack.c.bf16 %v1018_v55, %v1015_v53 }
 0x150   : > { %v3625_v47 = vpop.f32.mrf.mxu1 }
 0x155   : > { %v1021_v57 = vpop.f32.mrf.mxu2 }
 0x156   : > { %1496 = vrot.lane.b32.xlu2 %v1021_v57, %s3342_s27 }
 0x158   : > { %v3628_v58 = vpop.f32.mrf.mxu1 }
 0x15d   : > { %v1024_v59 = vpop.f32.mrf.mxu2 }
 0x15e   : > { %v1049_v19 = vpack.c.bf16 %v1024_v59, %v1021_v57 }
 0x160   : > { %v3630_v61 = vpop.f32.mrf.mxu1 }
 0x165   : > { %v1027_v62 = vpop.f32.mrf.mxu2 }
 0x168   : > { %v3632_v63 = vpop.f32.mrf.mxu1 }
 0x169   : > { %4314 = vst [vmem:[#allocation9_spill] sm:$0xff] %v3632_v63 }
 0x16d   : > { %v1030_v1 = vpop.f32.mrf.mxu2 }
 0x16e   : > { %1502 = vrot.lane.b32.xlu2 %v1030_v1, %s3342_s27  ;;  %v1050_v17 = vpack.c.bf16 %v1030_v1, %v1027_v62 }
 0x170   : > { %v3635_v2 = vpop.f32.mrf.mxu1 }
 0x171   : > { %4315 = vst [vmem:[#allocation10_spill] sm:$0xff] %v3635_v2 }
 0x175   : > { %v1033_v3 = vpop.f32.mrf.mxu2 }
 0x178   : > { %v3637_v5 = vpop.f32.mrf.mxu1 }
 0x179   : > { %4316 = vst [vmem:[#allocation11_spill] sm:$0xff] %v3637_v5 }
 0x17d   : > { %v1036_v6 = vpop.f32.mrf.mxu2 }
 0x17e   : > { %v1051_v15 = vpack.c.bf16 %v1036_v6, %v1033_v3 }
 0x180   : > { %v3639_v7 = vpop.f32.mrf.mxu1 }
 0x181   : > { %4317 = vst [vmem:[#allocation12_spill] sm:$0xff] %v3639_v7 }
 0x185   : > { %v1039_v9 = vpop.f32.mrf.mxu2 }
 0x186   : > { %1508 = vrot.lane.b32.xlu2 %v1039_v9, %s3342_s27 }
 0x188   : > { %v3642_v10 = vpop.f32.mrf.mxu1 }
 0x189   : > { %4318 = vst [vmem:[#allocation13_spill] sm:$0xff] %v3642_v10 }
 0x18d   : > { %v1042_v11 = vpop.f32.mrf.mxu2 }
 0x18e   : > { %v1052_v13 = vpack.c.bf16 %v1042_v11, %v1039_v9 }
 0x190   : > { %1149 = vmatpush.bf16.msra.mxu3 %v1052_v13  ;;  %v997_v14 = vpop.f32.mrf.mxu1 }
 0x191   : > { %1480 = vrot.lane.b32.xlu0 %v997_v14, %s3342_s27 }
 0x194   : > { %1150 = vmatpush.bf16.msra.mxu3 %v1051_v15 }
 0x198   : > { %1151 = vmatpush.bf16.msra.mxu3 %v1050_v17  ;;  %v1000_v18 = vpop.f32.mrf.mxu1 }
 0x199   : > { %1482 = vrot.lane.b32.xlu0 %v1000_v18, %s3342_s27  ;;  %v1045_v27 = vpack.c.bf16 %v1000_v18, %v997_v14  ;;  %v3708_v14 = vld [vmem:[%s3654_s12 + $0x50] sm:$0xff] }
 0x19c   : > { %1152 = vmatpush.bf16.msra.mxu3 %v1049_v19 }
 0x1a0   : > { %1153 = vmatpush.bf16.msra.mxu3 %v1048_v21  ;;  %v1003_v22 = vpop.f32.mrf.mxu1 }
 0x1a1   : > { %1484 = vrot.lane.b32.xlu1 %v1003_v22, %s3342_s27  ;;  %1492 = vrot.lane.b32.xlu0 %v1015_v53, %s3342_s27 }
 0x1a4   : > { %1154 = vmatpush.bf16.msra.mxu3 %v1047_v23 }
 0x1a8   : > { %v1006_v25 = vpop.f32.mrf.mxu1 }
 0x1a9   : > { %1486 = vrot.lane.b32.xlu1 %v1006_v25, %s3342_s27  ;;  %1498 = vrot.lane.b32.xlu0 %v1024_v59, %s3342_s27  ;;  %v1046_v26 = vpack.c.bf16 %v1006_v25, %v1003_v22  ;;  %v3700_v59 = vld [vmem:[%s3654_s12 + $0x48] sm:$0xff]  ;;  %v3716_v25 = vld [vmem:[%s3654_s12 + $0x58] sm:$0xff] }
 0x1aa   : > { %4319 = vst [vmem:[#allocation14_spill] sm:$0xff] %v3716_v25 }
 0x1ab   : > { %1155 = vmatpush.bf16.msra.mxu3 %v1046_v26 }
 0x1af   : > { %1156 = vmatpush.bf16.msra.mxu3 %v1045_v27 }
 0x1b1   : > { %1494 = vrot.lane.b32.xlu1 %v1018_v55, %s3342_s27  ;;  %1504 = vrot.lane.b32.xlu0 %v1033_v3, %s3342_s27 }
 0x1b2   : > { %1157 = vmatmul.bf16.vlgmr.msra.gmra.mxu3 %v3657_v29 }
 0x1b9   : > { %1500 = vrot.lane.b32.xlu1 %v1027_v62, %s3342_s27  ;;  %1510 = vrot.lane.b32.xlu0 %v1042_v11, %s3342_s27 }
 0x1c1   : > { %1506 = vrot.lane.b32.xlu1 %v1036_v6, %s3342_s27 }
 0x1c2   : > { %1162 = vmatmul.bf16.gmra.mxu3 %v3665_v30 }
 0x1d2   : > { %1167 = vmatmul.bf16.gmra.mxu3 %v3670_v31 }
 0x1e2   : > { %1172 = vmatmul.bf16.gmra.mxu3 %v3674_v33 }
 0x1f2   : > { %1177 = vmatmul.bf16.gmra.mxu3 %v3678_v35 }
 0x202   : > { %1182 = vmatmul.bf16.gmra.mxu3 %v3682_v39 }
 0x212   : > { %1187 = vmatmul.bf16.gmra.mxu3 %v3686_v43 }
 0x222   : > { %1192 = vmatmul.bf16.gmra.mxu3 %v3690_v49 }
 0x232   : > { %1197 = vmatmul.bf16.gmra.mxu3 %v3694_v50 }
 0x235   : > { %v1158_v51 = vpop.f32.mrf.mxu3 }
 0x236   : > { %v1159_v53 = vadd.f32 %v1158_v51, %v3514_v38 }
 0x238   : > { %v1238_v62 = vmax.f32 %v1159_v53, 0.0 }
 0x23d   : > { %v1160_v55 = vpop.f32.mrf.mxu3 }
 0x23e   : > { %v1161_v57 = vadd.f32 %v1160_v55, %v3523_v42 }
 0x240   : > { %v1239_v1 = vmax.f32 %v1161_v57, 0.0 }
 0x242   : > { %1202 = vmatmul.bf16.gmra.mxu3 %v3700_v59  ;;  %v3703_v3 = vpack.c.bf16 %v1239_v1, %v1238_v62  ;;  %v3722_v1 = vld [vmem:[%s3654_s12 + $0x60] sm:$0xff] }
 0x243   : > { %4320 = vst [vmem:[#allocation15_spill] sm:$0xff] %v3722_v1 }
 0x245   : > { %v1163_v6 = vpop.f32.mrf.mxu3 }
 0x246   : > { %v1164_v9 = vadd.f32 %v1163_v6, %v3529_v45 }
 0x248   : > { %v1240_v15 = vmax.f32 %v1164_v9, 0.0 }
 0x24d   : > { %v1165_v11 = vpop.f32.mrf.mxu3 }
 0x24e   : > { %v1166_v13 = vadd.f32 %v1165_v11, %v3535_v48 }
 0x250   : > { %v1241_v17 = vmax.f32 %v1166_v13, 0.0 }
 0x252   : > { %1207 = vmatmul.bf16.gmra.mxu3 %v3708_v14  ;;  %v3711_v18 = vpack.c.bf16 %v1241_v17, %v1240_v15  ;;  %v3726_v17 = vld [vmem:[%s3654_s12 + $0x68] sm:$0xff] }
 0x253   : > { %4321 = vst [vmem:[#allocation16_spill] sm:$0xff] %v3726_v17 }
 0x255   : > { %v1168_v19 = vpop.f32.mrf.mxu3 }
 0x256   : > { %v1169_v21 = vadd.f32 %v1168_v19, %v3539_v52 }
 0x258   : > { %v1242_v26 = vmax.f32 %v1169_v21, 0.0 }
 0x25d   : > { %v1170_v22 = vpop.f32.mrf.mxu3 }
 0x25e   : > { %v1171_v23 = vadd.f32 %v1170_v22, %v3544_v56  ;;  %v3730_v22 = vld [vmem:[%s3654_s12 + $0x70] sm:$0xff] }
 0x25f   : > { %4322 = vst [vmem:[#allocation17_spill] sm:$0xff] %v3730_v22 }
 0x260   : > { %v1243_v27 = vmax.f32 %v1171_v23, 0.0 }
 0x262   : > { %1212 = vmatmul.bf16.gmra.mxu3 %v3716_v25  ;;  %v1272_v51 = vpack.c.bf16 %v1243_v27, %v1242_v26  ;;  %v3734_v27 = vld [vmem:[%s3654_s12 + $0x78] sm:$0xff] }
 0x263   : > { %4323 = vst [vmem:[#allocation18_spill] sm:$0xff] %v3734_v27 }
 0x265   : > { %v1173_v53 = vpop.f32.mrf.mxu3 }
 0x266   : > { %v1174_v55 = vadd.f32 %v1173_v53, %v3549_v60 }
 0x268   : > { %v1244_v6 = vmax.f32 %v1174_v55, 0.0 }
 0x26d   : > { %v1175_v57 = vpop.f32.mrf.mxu3 }
 0x26e   : > { %v1176_v62 = vadd.f32 %v1175_v57, %v3554_v0 }
 0x270   : > { %v1245_v9 = vmax.f32 %v1176_v62, 0.0 }
 0x272   : > { %1217 = vmatmul.bf16.gmra.mxu3 %v3722_v1  ;;  %v1273_v11 = vpack.c.bf16 %v1245_v9, %v1244_v6 }
 0x275   : > { %v1178_v13 = vpop.f32.mrf.mxu3 }
 0x27d   : > { %v1180_v15 = vpop.f32.mrf.mxu3 }
 0x282   : > { %1222 = vmatmul.bf16.gmra.mxu3 %v3726_v17 }
 0x285   : > { %v1183_v19 = vpop.f32.mrf.mxu3 }
 0x286   : > { %v1184_v25 = vadd.f32 %v1183_v19, %v3569_v12  ;;  %v3287_v19 = vld [vmem:[%s3764_s14 + $0x54] sm:$0xf0] }
 0x28d   : > { %v1185_v21 = vpop.f32.mrf.mxu3 }
 0x292   : > { %1227 = vmatmul.bf16.gmra.mxu3 %v3730_v22  ;;  %v1186_v22 = vadd.f32 %v1185_v21, %v3574_v16 }
 0x295   : > { %v1188_v23 = vpop.f32.mrf.mxu3 }
 0x296   : > { %v1189_v9 = vadd.f32 %v1188_v23, %v3579_v20  ;;  %v1248_v23 = vmax.f32 %v1184_v25, 0.0  ;;  %v3140_v25 = vld [vmem:[%s3764_s14 + $0x40] sm:$0xf] }
 0x298   : > { %v1250_v56 = vmax.f32 %v1189_v9, 0.0 }
 0x29d   : > { %v1190_v26 = vpop.f32.mrf.mxu3 }
 0x29e   : > { %v1191_v62 = vadd.f32 %v1190_v26, %v3584_v24  ;;  %v1249_v26 = vmax.f32 %v1186_v22, 0.0 }
 0x2a0   : > { %v1251_v0 = vmax.f32 %v1191_v62, 0.0  ;;  %v1275_v21 = vpack.c.bf16 %v1249_v26, %v1248_v23  ;;  %v3289_v26 = vld [vmem:[%s3764_s14 + $0x64] sm:$0xf0] }
 0x2a2   : > { %1232 = vmatmul.bf16.gmra.mxu3 %v3734_v27  ;;  %v1276_v24 = vpack.c.bf16 %v1251_v0, %v1250_v56 }
 0x2a5   : > { %v1193_v53 = vpop.f32.mrf.mxu3 }
 0x2a6   : > { %v1194_v55 = vadd.f32 %v1193_v53, %v3589_v28  ;;  %v1181_v53 = vadd.f32 %v1180_v15, %v3564_v8 }
 0x2a8   : > { %v1252_v17 = vmax.f32 %v1194_v55, 0.0  ;;  %v1247_v55 = vmax.f32 %v1181_v53, 0.0  ;;  %v3156_v53 = vld [vmem:[%s3764_s14 + $0x60] sm:$0xf] }
 0x2ad   : > { %v1195_v57 = vpop.f32.mrf.mxu3 }
 0x2ae   : > { %v1196_v6 = vadd.f32 %v1195_v57, %v3594_v32  ;;  %v1179_v57 = vadd.f32 %v1178_v13, %v3559_v4 }
 0x2b0   : > { %v1253_v1 = vmax.f32 %v1196_v6, 0.0  ;;  %v1246_v62 = vmax.f32 %v1179_v57, 0.0  ;;  %v3778_v57 = vor.u32 %v3289_v26, %v3156_v53  ;;  %v3108_v26 = vld [vmem:[%s3764_s14] sm:$0xf] }
 0x2b2   : > { %v1277_v60 = vpack.c.bf16 %v1253_v1, %v1252_v17  ;;  %v3148_v17 = vld [vmem:[%s3764_s14 + $0x50] sm:$0xf]  ;;  %4326 = vst [vmem:[#allocation21_spill] sm:$0xff] %v3778_v57 }
 0x2b3   : > { %v3773_v22 = vor.u32 %v3287_v19, %v3148_v17 }
 0x2b4   : > { %1366 = vmatpush.bf16.msrb.mxu0 %v1277_v60  ;;  %3297 = vmatpush.bf16.msrb.mxu2 %v1277_v60  ;;  %v1274_v60 = vpack.c.bf16 %v1247_v55, %v1246_v62  ;;  %v3291_v62 = vld [vmem:[%s3764_s14 + $0x74] sm:$0xf0] }
 0x2b5   : > { %v3743_v27 = vpop.f32.mrf.mxu3  ;;  %4325 = vst [vmem:[#allocation20_spill] sm:$0xff] %v3773_v22 }
 0x2b8   : > { %1367 = vmatpush.bf16.msrb.mxu0 %v1276_v24  ;;  %3298 = vmatpush.bf16.msrb.mxu2 %v1276_v24 }
 0x2bc   : > { %1368 = vmatpush.bf16.msrb.mxu0 %v1275_v21  ;;  %3299 = vmatpush.bf16.msrb.mxu2 %v1275_v21  ;;  %v3164_v21 = vld [vmem:[%s3764_s14 + $0x70] sm:$0xf] }
 0x2bd   : > { %v3747_v1 = vpop.f32.mrf.mxu3 }
 0x2c0   : > { %1369 = vmatpush.bf16.msrb.mxu0 %v1274_v60  ;;  %3300 = vmatpush.bf16.msrb.mxu2 %v1274_v60  ;;  %v3783_v60 = vor.u32 %v3291_v62, %v3164_v21 }
 0x2c2   : > { %4327 = vst [vmem:[#allocation22_spill] sm:$0xff] %v3783_v60 }
 0x2c4   : > { %1370 = vmatpush.bf16.msrb.mxu0 %v1273_v11  ;;  %3301 = vmatpush.bf16.msrb.mxu2 %v1273_v11 }
 0x2c5   : > { %v3749_v15 = vpop.f32.mrf.mxu3 }
 0x2c8   : > { %1371 = vmatpush.bf16.msrb.mxu0 %v1272_v51  ;;  %3302 = vmatpush.bf16.msrb.mxu2 %v1272_v51  ;;  %v3285_v51 = vld [vmem:[%s3764_s14 + $0x44] sm:$0xf0] }
 0x2c9   : > { %v3768_v11 = vor.u32 %v3285_v51, %v3140_v25 }
 0x2cb   : > { %4324 = vst [vmem:[#allocation19_spill] sm:$0xff] %v3768_v11 }
 0x2cc   : > { %1372 = vmatpush.bf16.msrb.mxu0 %v3711_v18  ;;  %3303 = vmatpush.bf16.msrb.mxu2 %v3711_v18 }
 0x2cd   : > { %v3753_v56 = vpop.f32.mrf.mxu3 }
 0x2d0   : > { %1373 = vmatpush.bf16.msrb.mxu0 %v3703_v3  ;;  %3304 = vmatpush.bf16.msrb.mxu2 %v3703_v3 }
 0x2d3   : > { %1394 = vmatmul.bf16.vlgmr.msrb.gmra.mxu2 %v3768_v11  ;;  %v3277_v11 = vld [vmem:[%s3764_s14 + $0x4] sm:$0xf0] }
 0x2d5   : > { %v3757_v0 = vpop.f32.mrf.mxu3 }
 0x2dd   : > { %v1210_v24 = vpop.f32.mrf.mxu3 }
 0x2e3   : > { %1399 = vmatmul.bf16.gmra.mxu2 %v3773_v22 }
 0x2e5   : > { %v1213_v18 = vpop.f32.mrf.mxu3 }
 0x2ed   : > { %v1215_v3 = vpop.f32.mrf.mxu3 }
 0x2f3   : > { %1404 = vmatmul.bf16.gmra.mxu2 %v3778_v57  ;;  %v3791_v57 = vor.u32 %v3277_v11, %v3108_v26 }
 0x2f5   : > { %v1218_v13 = vpop.f32.mrf.mxu3  ;;  %1374 = vmatmul.bf16.vlgmr.msrb.gmra.mxu0 %v3791_v57 }
 0x2fd   : > { %v1220_v6 = vpop.f32.mrf.mxu3 }
 0x303   : > { %1409 = vmatmul.bf16.gmra.mxu2 %v3783_v60 }
 0x305   : > { %v1223_v9 = vpop.f32.mrf.mxu3 }
 0x30d   : > { %v1225_v23 = vpop.f32.mrf.mxu3 }
 0x30e   : > { %v1226_v62 = vadd.f32 %v1225_v23, %v3632_v63  ;;  %v3116_v23 = vld [vmem:[%s3764_s14 + $0x10] sm:$0xf]  ;;  %v3279_v63 = vld [vmem:[%s3764_s14 + $0x14] sm:$0xf0] }
 0x310   : > { %v1265_v11 = vmax.f32 %v1226_v62, 0.0  ;;  %v1199_v62 = vadd.f32 %v3743_v27, %v3599_v34 }
 0x315   : > { %v1228_v55 = vpop.f32.mrf.mxu3 }
 0x316   : > { %v1229_v4 = vadd.f32 %v1228_v55, %v3635_v2  ;;  %v1219_v55 = vadd.f32 %v1218_v13, %v3625_v47  ;;  %v1209_v13 = vadd.f32 %v3757_v0, %v3615_v36  ;;  %v1201_v0 = vadd.f32 %v3747_v1, %v3603_v37  ;;  %v3110_v1 = vld [vmem:[%s3764_s14 + $0x8] sm:$0xf0] }
 0x31d   : > { %v1230_v25 = vpop.f32.mrf.mxu3 }
 0x31e   : > { %v1231_v22 = vadd.f32 %v1230_v25, %v3637_v5  ;;  %v1224_v25 = vadd.f32 %v1223_v9, %v3630_v61  ;;  %v1266_v5 = vmax.f32 %v1229_v4, 0.0  ;;  %v3803_v4 = vor.u32 %v3279_v63, %v3116_v23  ;;  %v3283_v23 = vld [vmem:[%s3764_s14 + $0x34] sm:$0xf0] }
 0x31f   : > { %v1204_v63 = vadd.f32 %v3749_v15, %v3607_v40  ;;  %v3124_v15 = vld [vmem:[%s3764_s14 + $0x20] sm:$0xf] }
 0x320   : > { %1379 = vmatmul.bf16.gmra.mxu0 %v3803_v4 }
 0x325   : > { %v1233_v51 = vpop.f32.mrf.mxu3 }
 0x326   : > { %v1234_v17 = vadd.f32 %v1233_v51, %v3639_v7  ;;  %v1267_v51 = vmax.f32 %v1231_v22, 0.0  ;;  %v1262_v22 = vmax.f32 %v1219_v55, 0.0 }
 0x328   : > { %v1268_v8 = vmax.f32 %v1234_v17, 0.0  ;;  %v1284_v26 = vpack.c.bf16 %v1267_v51, %v1266_v5  ;;  %v1264_v17 = vmax.f32 %v1224_v25, 0.0  ;;  %v1256_v51 = vmax.f32 %v1204_v63, 0.0 }
 0x32d   : > { %v1235_v19 = vpop.f32.mrf.mxu3 }
 0x32e   : > { %v1236_v53 = vadd.f32 %v1235_v19, %v3642_v10  ;;  %v1221_v19 = vadd.f32 %v1220_v6, %v3628_v58  ;;  %v1283_v10 = vpack.c.bf16 %v1265_v11, %v1264_v17  ;;  %v1211_v6 = vadd.f32 %v1210_v24, %v3618_v41 }
 0x32f   : > { %v1254_v11 = vmax.f32 %v1199_v62, 0.0 }
 0x330   : > { %v1269_v21 = vmax.f32 %v1236_v53, 0.0  ;;  %v1216_v53 = vadd.f32 %v1215_v3, %v3623_v54  ;;  %v1263_v2 = vmax.f32 %v1221_v19, 0.0  ;;  %v1259_v3 = vmax.f32 %v1211_v6, 0.0  ;;  %v3281_v19 = vld [vmem:[%s3764_s14 + $0x24] sm:$0xf0] }
 0x331   : > { %v3821_v55 = vor.u32 %v3281_v19, %v3124_v15  ;;  %v3866_v15 = vld [vmem:[%s4251_s8 + $0x18] sm:$0xff]  ;;  %v3871_v19 = vld [vmem:[%s4251_s8 + $0x10] sm:$0xff] }
 0x332   : > { %v1285_v60 = vpack.c.bf16 %v1269_v21, %v1268_v8  ;;  %v1214_v8 = vadd.f32 %v1213_v18, %v3621_v44  ;;  %v1261_v9 = vmax.f32 %v1216_v53, 0.0  ;;  %v1282_v5 = vpack.c.bf16 %v1263_v2, %v1262_v22  ;;  %v3132_v53 = vld [vmem:[%s3764_s14 + $0x30] sm:$0xf]  ;;  %v3118_v22 = vld [vmem:[%s3764_s14 + $0x18] sm:$0xf0]  ;;  %1588 = vmatpush.msra.mxu0 %v3866_v15  ;;  %2137 = vmatpush.msrb.mxu1 %v3866_v15 }
 0x333   : > { %v1206_v18 = vadd.f32 %v3753_v56, %v3611_v46  ;;  %v1258_v2 = vmax.f32 %v1209_v13, 0.0  ;;  %v1255_v56 = vmax.f32 %v1201_v0, 0.0  ;;  %1384 = vmatmul.bf16.gmra.mxu0 %v3821_v55  ;;  %v3831_v6 = vor.u32 %v3283_v23, %v3132_v53  ;;  %v3126_v13 = vld [vmem:[%s3764_s14 + $0x28] sm:$0xf0] }
 0x334   : > { %1415 = vmatpush.bf16.msra.mxu2 %v1285_v60  ;;  %v1260_v60 = vmax.f32 %v1214_v8, 0.0  ;;  %v3278_v8 = vld [vmem:[%s3764_s14 + $0x14] sm:$0xf]  ;;  %v3142_v0 = vld [vmem:[%s3764_s14 + $0x48] sm:$0xf0]  ;;  %1589 = vmatpush.msra.mxu0 %v3871_v19 }
 0x335   : > { %v1257_v24 = vmax.f32 %v1206_v18, 0.0  ;;  %v1280_v21 = vpack.c.bf16 %v1259_v3, %v1258_v2  ;;  %v1278_v17 = vpack.c.bf16 %v1255_v56, %v1254_v11  ;;  %v3282_v18 = vld [vmem:[%s3764_s14 + $0x34] sm:$0xf]  ;;  %v3134_v3 = vld [vmem:[%s3764_s14 + $0x38] sm:$0xf0]  ;;  %2138 = vmatpush.msrb.mxu1 %v3871_v19  ;;  %v3887_v23 = vld [vmem:[%s4251_s8 + $0x8] sm:$0xff] }
 0x336   : > { %v3284_v2 = vld [vmem:[%s3764_s14 + $0x44] sm:$0xf]  ;;  %v3150_v56 = vld [vmem:[%s3764_s14 + $0x58] sm:$0xf0]  ;;  %1590 = vmatpush.msra.mxu0 %v3887_v23 }
 0x337   : > { %v1279_v25 = vpack.c.bf16 %v1257_v24, %v1256_v51  ;;  %v3851_v24 = vor.u32 %v3284_v2, %v3142_v0  ;;  %v3286_v51 = vld [vmem:[%s3764_s14 + $0x54] sm:$0xf]  ;;  %2139 = vmatpush.msrb.mxu1 %v3887_v23 }
 0x338   : > { %1416 = vmatpush.bf16.msra.mxu2 %v1284_v26  ;;  %v3276_v26 = vld [vmem:[%s3764_s14 + $0x4] sm:$0xf] }
 0x339   : > { %v3823_v27 = vor.u32 %v3276_v26, %v3110_v1  ;;  %4332 = vst [vmem:[#allocation27_spill] sm:$0xff] %v3851_v24  ;;  %v3288_v26 = vld [vmem:[%s3764_s14 + $0x64] sm:$0xf]  ;;  %v3158_v1 = vld [vmem:[%s3764_s14 + $0x68] sm:$0xf0] }
 0x33b   : > { %4328 = vst [vmem:[#allocation23_spill] sm:$0xff] %v3823_v27 }
 0x33c   : > { %1417 = vmatpush.bf16.msra.mxu2 %v1283_v10  ;;  %v1281_v10 = vpack.c.bf16 %v1261_v9, %v1260_v60  ;;  %v3833_v9 = vor.u32 %v3278_v8, %v3118_v22  ;;  %v3894_v8 = vld [vmem:[%s4251_s8] sm:$0xff] }
 0x33d   : > { %1591 = vmatpush.msra.mxu0 %v3894_v8  ;;  %2140 = vmatpush.msrb.mxu1 %v3894_v8 }
 0x33e   : > { %4329 = vst [vmem:[#allocation24_spill] sm:$0xff] %v3833_v9 }
 0x340   : > { %1418 = vmatpush.bf16.msra.mxu2 %v1282_v5  ;;  %v3280_v5 = vld [vmem:[%s3764_s14 + $0x24] sm:$0xf] }
 0x341   : > { %v3839_v60 = vor.u32 %v3280_v5, %v3126_v13  ;;  %v3290_v5 = vld [vmem:[%s3764_s14 + $0x74] sm:$0xf]  ;;  %v3166_v13 = vld [vmem:[%s3764_s14 + $0x78] sm:$0xf0] }
 0x343   : > { %1389 = vmatmul.bf16.gmra.mxu0 %v3831_v6  ;;  %4330 = vst [vmem:[#allocation25_spill] sm:$0xff] %v3839_v60 }
 0x344   : > { %1419 = vmatpush.bf16.msra.mxu2 %v1281_v10  ;;  %v3844_v10 = vor.u32 %v3282_v18, %v3134_v3  ;;  %v3900_v18 = vor.u32 %v3290_v5, %v3166_v13 }
 0x346   : > { %4331 = vst [vmem:[#allocation26_spill] sm:$0xff] %v3844_v10 }
 0x347   : > { %4335 = vst [vmem:[#allocation30_spill] sm:$0xff] %v3900_v18 }
 0x348   : > { %1420 = vmatpush.bf16.msra.mxu2 %v1280_v21 }
 0x34c   : > { %1421 = vmatpush.bf16.msra.mxu2 %v1279_v25  ;;  %v3860_v25 = vor.u32 %v3286_v51, %v3150_v56 }
 0x34e   : > { %4333 = vst [vmem:[#allocation28_spill] sm:$0xff] %v3860_v25 }
 0x350   : > { %1422 = vmatpush.bf16.msra.mxu2 %v1278_v17  ;;  %v3881_v17 = vor.u32 %v3288_v26, %v3158_v1 }
 0x352   : > { %4334 = vst [vmem:[#allocation29_spill] sm:$0xff] %v3881_v17 }
 0x353   : > { %1423 = vmatmul.bf16.vlgmr.msra.gmra.mxu2 %v3823_v27 }
 0x356   : > { %v3847_v63 = vpop.f32.mrf.mxu2 }
 0x35e   : > { %v3853_v21 = vpop.f32.mrf.mxu2 }
 0x363   : > { %1428 = vmatmul.bf16.gmra.mxu2 %v3833_v9 }
 0x366   : > { %v3856_v62 = vpop.f32.mrf.mxu2 }
 0x36e   : > { %v3875_v11 = vpop.f32.mrf.mxu2 }
 0x372   : > { %v1375_v2 = vpop.f32.mrf.mxu0 }
 0x373   : > { %1433 = vmatmul.bf16.gmra.mxu2 %v3839_v60 }
 0x376   : > { %v1405_v53 = vpop.f32.mrf.mxu2 }
 0x37a   : > { %v1377_v51 = vpop.f32.mrf.mxu0 }
 0x37e   : > { %v1407_v22 = vpop.f32.mrf.mxu2 }
 0x383   : > { %1438 = vmatmul.bf16.gmra.mxu2 %v3844_v10 }
 0x386   : > { %v1410_v3 = vpop.f32.mrf.mxu2 }
 0x38e   : > { %v1412_v0 = vpop.f32.mrf.mxu2 }
 0x393   : > { %1443 = vmatmul.bf16.gmra.mxu2 %v3851_v24 }
 0x39d   : > { %v1380_v1 = vpop.f32.mrf.mxu0 }
 0x3a3   : > { %1448 = vmatmul.bf16.gmra.mxu2 %v3860_v25 }
 0x3a5   : > { %v1382_v24 = vpop.f32.mrf.mxu0 }
 0x3b3   : > { %1453 = vmatmul.bf16.gmra.mxu2 %v3881_v17 }
 0x3c3   : > { %1458 = vmatmul.bf16.gmra.mxu2 %v3900_v18  ;;  %v1385_v18 = vpop.f32.mrf.mxu0 }
 0x3d6   : > { %v1424_v56 = vpop.f32.mrf.mxu2 }
 0x3d7   : > { %v1425_v26 = vadd.f32 %v1424_v56, %v1375_v2  ;;  %v1387_v2 = vpop.f32.mrf.mxu0 }
 0x3d9   : > { %3170 = vmatmul.msk.f32.vlgmr.msra.gmra.mxu0 %vm931_vm1, %v1425_v26 }
 0x3de   : > { %v1426_v17 = vpop.f32.mrf.mxu2 }
 0x3df   : > { %v1427_v25 = vadd.f32 %v1426_v17, %v1377_v51 }
 0x3e1   : > { %3171 = vmatmul.msk.f32.gmra.mxu0 %vm931_vm1, %v1427_v25  ;;  %v1390_v25 = vpop.f32.mrf.mxu0 }
 0x3e6   : > { %v1429_v10 = vpop.f32.mrf.mxu2 }
 0x3e7   : > { %v1430_v60 = vadd.f32 %v1429_v10, %v1380_v1 }
 0x3e9   : > { %3172 = vmatmul.msk.f32.gmra.mxu0 %vm931_vm1, %v1430_v60  ;;  %v1392_v60 = vpop.f32.mrf.mxu0 }
 0x3ee   : > { %v1431_v5 = vpop.f32.mrf.mxu2 }
 0x3ef   : > { %v1432_v13 = vadd.f32 %v1431_v5, %v1382_v24 }
 0x3f1   : > { %3173 = vmatmul.msk.f32.gmra.mxu0 %vm931_vm1, %v1432_v13 }
 0x3f6   : > { %v1434_v9 = vpop.f32.mrf.mxu2 }
 0x3f7   : > { %v1435_v27 = vadd.f32 %v1434_v9, %v1385_v18 }
 0x3f9   : > { %3174 = vmatmul.msk.f32.gmra.mxu0 %vm931_vm1, %v1435_v27 }
 0x3fe   : > { %v1436_v56 = vpop.f32.mrf.mxu2 }
 0x3ff   : > { %v1437_v26 = vadd.f32 %v1436_v56, %v1387_v2 }
 0x401   : > { %3175 = vmatmul.msk.f32.gmra.mxu0 %vm931_vm1, %v1437_v26 }
 0x406   : > { %v1439_v17 = vpop.f32.mrf.mxu2 }
 0x407   : > { %v1440_v51 = vadd.f32 %v1439_v17, %v1390_v25 }
 0x409   : > { %3176 = vmatmul.msk.f32.gmra.mxu0 %vm931_vm1, %v1440_v51 }
 0x40e   : > { %v1441_v10 = vpop.f32.mrf.mxu2 }
 0x40f   : > { %v1442_v24 = vadd.f32 %v1441_v10, %v1392_v60  ;;  %v1481_v10 = vpop.permute.xlu0 %1480 }
 0x411   : > { %3177 = vmatmul.msk.f32.gmra.mxu0 %vm931_vm1, %v1442_v24 }
 0x416   : > { %v1444_v1 = vpop.f32.mrf.mxu2 }
 0x417   : > { %v1445_v9 = vadd.f32 %v1444_v1, %v3847_v63 }
 0x419   : > { %3178 = vmatmul.msk.f32.gmra.mxu0 %vm931_vm1, %v1445_v9 }
 0x41e   : > { %v1446_v27 = vpop.f32.mrf.mxu2 }
 0x41f   : > { %v1447_v18 = vadd.f32 %v1446_v27, %v3853_v21 }
 0x421   : > { %3179 = vmatmul.msk.f32.gmra.mxu0 %vm931_vm1, %v1447_v18  ;;  %v1485_v18 = vpop.permute.xlu1 %1484 }
 0x426   : > { %v1449_v5 = vpop.f32.mrf.mxu2 }
 0x427   : > { %v1450_v13 = vadd.f32 %v1449_v5, %v3856_v62 }
 0x429   : > { %3180 = vmatmul.msk.f32.gmra.mxu0 %vm931_vm1, %v1450_v13 }
 0x42e   : > { %v1451_v2 = vpop.f32.mrf.mxu2 }
 0x42f   : > { %v1452_v56 = vadd.f32 %v1451_v2, %v3875_v11 }
 0x431   : > { %3181 = vmatmul.msk.f32.gmra.mxu0 %vm931_vm1, %v1452_v56 }
 0x436   : > { %v1454_v26 = vpop.f32.mrf.mxu2 }
 0x437   : > { %v1455_v25 = vadd.f32 %v1454_v26, %v1405_v53  ;;  %v1483_v53 = vpop.permute.xlu0 %1482 }
 0x439   : > { %3182 = vmatmul.msk.f32.gmra.mxu0 %vm931_vm1, %v1455_v25  ;;  %v1489_v25 = vpop.permute.xlu2 %1488 }
 0x43e   : > { %v1456_v63 = vpop.f32.mrf.mxu2 }
 0x43f   : > { %v1457_v17 = vadd.f32 %v1456_v63, %v1407_v22 }
 0x441   : > { %3183 = vmatmul.msk.f32.gmra.mxu0 %vm931_vm1, %v1457_v17 }
 0x446   : > { %v1459_v21 = vpop.f32.mrf.mxu2 }
 0x447   : > { %v1460_v51 = vadd.f32 %v1459_v21, %v1410_v3 }
 0x449   : > { %3184 = vmatmul.msk.f32.gmra.mxu0 %vm931_vm1, %v1460_v51  ;;  %v1491_v51 = vpop.permute.xlu2 %1490 }
 0x44e   : > { %v1461_v62 = vpop.f32.mrf.mxu2 }
 0x44f   : > { %v1462_v60 = vadd.f32 %v1461_v62, %v1412_v0  ;;  %v1487_v0 = vpop.permute.xlu1 %1486 }
 0x451   : > { %3185 = vmatmul.msk.f32.gmra.mxu0 %vm931_vm1, %v1462_v60 }
 0x456   : > { %v1593_v11 = vpop.f32.mrf.mxu0 }
 0x457   : > { %v1594_v24 = vadd.f32 %v1593_v11, %v1481_v10  ;;  %v1493_v11 = vpop.permute.xlu0 %1492 }
 0x459   : > { %v1641_v1 = vmax.f32 %v1594_v24, 0.0 }
 0x45b   : > { %3186 = vmatmul.msk.f32.vlgmr.msra.gmra.mxu1 %vm931_vm1, %v1641_v1 }
 0x45e   : > { %v1596_v9 = vpop.f32.mrf.mxu0 }
 0x45f   : > { %v1597_v27 = vadd.f32 %v1596_v9, %v1483_v53  ;;  %v1495_v9 = vpop.permute.xlu1 %1494 }
 0x461   : > { %v1642_v22 = vmax.f32 %v1597_v27, 0.0 }
 0x463   : > { %3187 = vmatmul.msk.f32.gmra.mxu1 %vm931_vm1, %v1642_v22 }
 0x466   : > { %v1599_v3 = vpop.f32.mrf.mxu0 }
 0x467   : > { %v1600_v5 = vadd.f32 %v1599_v3, %v1485_v18  ;;  %v1497_v3 = vpop.permute.xlu2 %1496 }
 0x469   : > { %v1643_v13 = vmax.f32 %v1600_v5, 0.0 }
 0x46b   : > { %3188 = vmatmul.msk.f32.gmra.mxu1 %vm931_vm1, %v1643_v13 }
 0x46e   : > { %v1602_v2 = vpop.f32.mrf.mxu0 }
 0x46f   : > { %v1603_v56 = vadd.f32 %v1602_v2, %v1487_v0  ;;  %v1499_v2 = vpop.permute.xlu0 %1498 }
 0x471   : > { %v1644_v26 = vmax.f32 %v1603_v56, 0.0 }
 0x473   : > { %3189 = vmatmul.msk.f32.gmra.mxu1 %vm931_vm1, %v1644_v26 }
 0x476   : > { %v1605_v63 = vpop.f32.mrf.mxu0 }
 0x477   : > { %v1606_v17 = vadd.f32 %v1605_v63, %v1489_v25  ;;  %v1501_v63 = vpop.permute.xlu1 %1500 }
 0x479   : > { %v1645_v21 = vmax.f32 %v1606_v17, 0.0 }
 0x47b   : > { %3190 = vmatmul.msk.f32.gmra.mxu1 %vm931_vm1, %v1645_v21 }
 0x47e   : > { %v1608_v62 = vpop.f32.mrf.mxu0 }
 0x47f   : > { %v1609_v60 = vadd.f32 %v1608_v62, %v1491_v51  ;;  %v1503_v62 = vpop.permute.xlu2 %1502 }
 0x481   : > { %v1646_v10 = vmax.f32 %v1609_v60, 0.0 }
 0x483   : > { %3191 = vmatmul.msk.f32.gmra.mxu1 %vm931_vm1, %v1646_v10 }
 0x486   : > { %v1611_v24 = vpop.f32.mrf.mxu0 }
 0x487   : > { %v1612_v1 = vadd.f32 %v1611_v24, %v1493_v11  ;;  %v1505_v24 = vpop.permute.xlu0 %1504 }
 0x489   : > { %v1647_v53 = vmax.f32 %v1612_v1, 0.0 }
 0x48b   : > { %3192 = vmatmul.msk.f32.gmra.mxu1 %vm931_vm1, %v1647_v53 }
 0x48e   : > { %v1614_v27 = vpop.f32.mrf.mxu0 }
 0x48f   : > { %v1615_v22 = vadd.f32 %v1614_v27, %v1495_v9  ;;  %v1507_v27 = vpop.permute.xlu1 %1506 }
 0x491   : > { %v1648_v18 = vmax.f32 %v1615_v22, 0.0 }
 0x493   : > { %3193 = vmatmul.msk.f32.gmra.mxu1 %vm931_vm1, %v1648_v18 }
 0x496   : > { %v1617_v5 = vpop.f32.mrf.mxu0 }
 0x497   : > { %v1618_v13 = vadd.f32 %v1617_v5, %v1497_v3  ;;  %v1509_v5 = vpop.permute.xlu2 %1508 }
 0x499   : > { %v1649_v0 = vmax.f32 %v1618_v13, 0.0 }
 0x49b   : > { %3194 = vmatmul.msk.f32.gmra.mxu1 %vm931_vm1, %v1649_v0 }
 0x49e   : > { %v1620_v56 = vpop.f32.mrf.mxu0 }
 0x49f   : > { %v1621_v26 = vadd.f32 %v1620_v56, %v1499_v2  ;;  %v1511_v56 = vpop.permute.xlu0 %1510 }
 0x4a1   : > { %v1650_v25 = vmax.f32 %v1621_v26, 0.0 }
 0x4a3   : > { %3195 = vmatmul.msk.f32.gmra.mxu1 %vm931_vm1, %v1650_v25 }
 0x4a6   : > { %v1623_v17 = vpop.f32.mrf.mxu0 }
 0x4a7   : > { %v1624_v21 = vadd.f32 %v1623_v17, %v1501_v63 }
 0x4a9   : > { %v1651_v51 = vmax.f32 %v1624_v21, 0.0 }
 0x4ab   : > { %3196 = vmatmul.msk.f32.gmra.mxu1 %vm931_vm1, %v1651_v51 }
 0x4ae   : > { %v1626_v60 = vpop.f32.mrf.mxu0 }
 0x4af   : > { %v1627_v10 = vadd.f32 %v1626_v60, %v1503_v62 }
 0x4b1   : > { %v1652_v11 = vmax.f32 %v1627_v10, 0.0 }
 0x4b3   : > { %3197 = vmatmul.msk.f32.gmra.mxu1 %vm931_vm1, %v1652_v11 }
 0x4b6   : > { %v1629_v1 = vpop.f32.mrf.mxu0 }
 0x4b7   : > { %v1630_v53 = vadd.f32 %v1629_v1, %v1505_v24 }
 0x4b9   : > { %v1653_v9 = vmax.f32 %v1630_v53, 0.0 }
 0x4bb   : > { %3198 = vmatmul.msk.f32.gmra.mxu1 %vm931_vm1, %v1653_v9 }
 0x4be   : > { %v1632_v22 = vpop.f32.mrf.mxu0 }
 0x4bf   : > { %v1633_v18 = vadd.f32 %v1632_v22, %v1507_v27 }
 0x4c1   : > { %v1654_v3 = vmax.f32 %v1633_v18, 0.0 }
 0x4c3   : > { %3199 = vmatmul.msk.f32.gmra.mxu1 %vm931_vm1, %v1654_v3 }
 0x4c6   : > { %v1635_v13 = vpop.f32.mrf.mxu0 }
 0x4c7   : > { %v1636_v0 = vadd.f32 %v1635_v13, %v1509_v5 }
 0x4c9   : > { %v1655_v2 = vmax.f32 %v1636_v0, 0.0 }
 0x4cb   : > { %3200 = vmatmul.msk.f32.gmra.mxu1 %vm931_vm1, %v1655_v2 }
 0x4ce   : > { %v1638_v26 = vpop.f32.mrf.mxu0 }
 0x4cf   : > { %v1639_v25 = vadd.f32 %v1638_v26, %v1511_v56 }
 0x4d1   : > { %v1656_v63 = vmax.f32 %v1639_v25, 0.0 }
 0x4d3   : > { %3201 = vmatmul.msk.f32.gmra.mxu1 %vm931_vm1, %v1656_v63 }
 0x4d8   : > { %v1722_v17 = vpop.f32.mrf.mxu1 }
 0x4d9   : > { %2029 = vrot.lane.b32.xlu1 %v1722_v17, %s3342_s27 }
 0x4e0   : > { %v1725_v21 = vpop.f32.mrf.mxu1 }
 0x4e1   : > { %2031 = vrot.lane.b32.xlu2 %v1725_v21, %s3342_s27  ;;  %v1770_v34 = vpack.c.bf16 %v1725_v21, %v1722_v17 }
 0x4e8   : > { %v1728_v51 = vpop.f32.mrf.mxu1 }
 0x4e9   : > { %2033 = vrot.lane.b32.xlu0 %v1728_v51, %s3342_s27 }
 0x4f0   : > { %v1731_v62 = vpop.f32.mrf.mxu1 }
 0x4f1   : > { %2035 = vrot.lane.b32.xlu1 %v1731_v62, %s3342_s27  ;;  %v1771_v63 = vpack.c.bf16 %v1731_v62, %v1728_v51 }
 0x4f8   : > { %v1734_v60 = vpop.f32.mrf.mxu1 }
 0x4f9   : > { %2037 = vrot.lane.b32.xlu2 %v1734_v60, %s3342_s27 }
 0x500   : > { %v1737_v10 = vpop.f32.mrf.mxu1 }
 0x501   : > { %2039 = vrot.lane.b32.xlu0 %v1737_v10, %s3342_s27  ;;  %v1772_v25 = vpack.c.bf16 %v1737_v10, %v1734_v60 }
 0x508   : > { %v1740_v11 = vpop.f32.mrf.mxu1 }
 0x509   : > { %2041 = vrot.lane.b32.xlu1 %v1740_v11, %s3342_s27 }
 0x510   : > { %v1743_v24 = vpop.f32.mrf.mxu1 }
 0x511   : > { %2043 = vrot.lane.b32.xlu2 %v1743_v24, %s3342_s27  ;;  %v1773_v26 = vpack.c.bf16 %v1743_v24, %v1740_v11  ;;  %v4336_v24 = vld [vmem:[#allocation2_spill] sm:$0xff] }
 0x518   : > { %v1746_v1 = vpop.f32.mrf.mxu1 }
 0x519   : > { %2045 = vrot.lane.b32.xlu0 %v1746_v1, %s3342_s27 }
 0x520   : > { %v1749_v53 = vpop.f32.mrf.mxu1 }
 0x521   : > { %2047 = vrot.lane.b32.xlu1 %v1749_v53, %s3342_s27  ;;  %v1774_v56 = vpack.c.bf16 %v1749_v53, %v1746_v1 }
 0x528   : > { %v1752_v9 = vpop.f32.mrf.mxu1 }
 0x529   : > { %2049 = vrot.lane.b32.xlu2 %v1752_v9, %s3342_s27 }
 0x530   : > { %v1755_v27 = vpop.f32.mrf.mxu1 }
 0x531   : > { %2051 = vrot.lane.b32.xlu0 %v1755_v27, %s3342_s27  ;;  %v1775_v2 = vpack.c.bf16 %v1755_v27, %v1752_v9  ;;  %v4337_v9 = vld [vmem:[#allocation14_spill] sm:$0xff] }
 0x538   : > { %v1758_v22 = vpop.f32.mrf.mxu1 }
 0x539   : > { %2053 = vrot.lane.b32.xlu1 %v1758_v22, %s3342_s27 }
 0x540   : > { %v1761_v18 = vpop.f32.mrf.mxu1 }
 0x541   : > { %2055 = vrot.lane.b32.xlu2 %v1761_v18, %s3342_s27  ;;  %v1776_v0 = vpack.c.bf16 %v1761_v18, %v1758_v22  ;;  %v4338_v18 = vld [vmem:[#allocation3_spill] sm:$0xff] }
 0x548   : > { %v1764_v3 = vpop.f32.mrf.mxu1 }
 0x549   : > { %2057 = vrot.lane.b32.xlu0 %v1764_v3, %s3342_s27 }
 0x550   : > { %v1767_v5 = vpop.f32.mrf.mxu1 }
 0x551   : > { %v1777_v13 = vpack.c.bf16 %v1767_v5, %v1764_v3  ;;  %2059 = vrot.lane.b32.xlu1 %v1767_v5, %s3342_s27 }
 0x553   : > { %1778 = vmatpush.bf16.msrb.mxu2 %v1777_v13  ;;  %v4339_v13 = vld [vmem:[#allocation4_spill] sm:$0xff] }
 0x557   : > { %1779 = vmatpush.bf16.msrb.mxu2 %v1776_v0 }
 0x55b   : > { %1780 = vmatpush.bf16.msrb.mxu2 %v1775_v2 }
 0x55f   : > { %1781 = vmatpush.bf16.msrb.mxu2 %v1774_v56  ;;  %v4340_v56 = vld [vmem:[#allocation15_spill] sm:$0xff] }
 0x563   : > { %1782 = vmatpush.bf16.msrb.mxu2 %v1773_v26 }
 0x567   : > { %1783 = vmatpush.bf16.msrb.mxu2 %v1772_v25 }
 0x56b   : > { %1784 = vmatpush.bf16.msrb.mxu2 %v1771_v63 }
 0x56f   : > { %1785 = vmatpush.bf16.msrb.mxu2 %v1770_v34 }
 0x572   : > { %1786 = vmatmul.bf16.vlgmr.msrb.gmra.mxu2 %v3657_v29 }
 0x582   : > { %1791 = vmatmul.bf16.gmra.mxu2 %v3665_v30 }
 0x592   : > { %1796 = vmatmul.bf16.gmra.mxu2 %v3670_v31 }
 0x5a2   : > { %1801 = vmatmul.bf16.gmra.mxu2 %v3674_v33 }
 0x5b2   : > { %1806 = vmatmul.bf16.gmra.mxu2 %v3678_v35 }
 0x5c2   : > { %1811 = vmatmul.bf16.gmra.mxu2 %v3682_v39 }
 0x5d2   : > { %1816 = vmatmul.bf16.gmra.mxu2 %v3686_v43 }
 0x5e2   : > { %1821 = vmatmul.bf16.gmra.mxu2 %v3690_v49 }
 0x5f2   : > { %1826 = vmatmul.bf16.gmra.mxu2 %v3694_v50 }
 0x5f5   : > { %v1787_v17 = vpop.f32.mrf.mxu2 }
 0x5f6   : > { %v1788_v34 = vadd.f32 %v1787_v17, %v3514_v38  ;;  %v4341_v17 = vld [vmem:[#allocation16_spill] sm:$0xff] }
 0x5f8   : > { %v1867_v21 = vmax.f32 %v1788_v34, 0.0 }
 0x5fd   : > { %v1789_v29 = vpop.f32.mrf.mxu2 }
 0x5fe   : > { %v1790_v30 = vadd.f32 %v1789_v29, %v3523_v42 }
 0x600   : > { %v1868_v31 = vmax.f32 %v1790_v30, 0.0  ;;  %v4342_v30 = vld [vmem:[#allocation17_spill] sm:$0xff] }
 0x602   : > { %1831 = vmatmul.bf16.gmra.mxu2 %v3700_v59  ;;  %v3967_v33 = vpack.c.bf16 %v1868_v31, %v1867_v21 }
 0x605   : > { %v1792_v35 = vpop.f32.mrf.mxu2 }
 0x606   : > { %v1793_v39 = vadd.f32 %v1792_v35, %v3529_v45  ;;  %v4343_v35 = vld [vmem:[#allocation18_spill] sm:$0xff] }
 0x608   : > { %v1869_v51 = vmax.f32 %v1793_v39, 0.0 }
 0x60d   : > { %v1794_v43 = vpop.f32.mrf.mxu2 }
 0x60e   : > { %v1795_v49 = vadd.f32 %v1794_v43, %v3535_v48 }
 0x610   : > { %v1870_v50 = vmax.f32 %v1795_v49, 0.0 }
 0x612   : > { %1836 = vmatmul.bf16.gmra.mxu2 %v3708_v14  ;;  %v1900_v62 = vpack.c.bf16 %v1870_v50, %v1869_v51  ;;  %v4344_v51 = vld [vmem:[#allocation7_spill] sm:$0xff] }
 0x615   : > { %v1797_v60 = vpop.f32.mrf.mxu2 }
 0x616   : > { %v1798_v10 = vadd.f32 %v1797_v60, %v3539_v52 }
 0x618   : > { %v1871_v59 = vmax.f32 %v1798_v10, 0.0 }
 0x61d   : > { %v1799_v11 = vpop.f32.mrf.mxu2 }
 0x61e   : > { %v1800_v1 = vadd.f32 %v1799_v11, %v4336_v24 }
 0x620   : > { %v1872_v53 = vmax.f32 %v1800_v1, 0.0 }
 0x622   : > { %1841 = vmatmul.bf16.gmra.mxu2 %v4337_v9  ;;  %v1901_v27 = vpack.c.bf16 %v1872_v53, %v1871_v59 }
 0x625   : > { %v1802_v22 = vpop.f32.mrf.mxu2 }
 0x626   : > { %v1803_v3 = vadd.f32 %v1802_v22, %v4338_v18 }
 0x628   : > { %v1873_v2 = vmax.f32 %v1803_v3, 0.0 }
 0x62d   : > { %v1804_v5 = vpop.f32.mrf.mxu2 }
 0x62e   : > { %v1805_v0 = vadd.f32 %v1804_v5, %v4339_v13 }
 0x630   : > { %v1874_v14 = vmax.f32 %v1805_v0, 0.0  ;;  %v4345_v0 = vld [vmem:[#allocation6_spill] sm:$0xff] }
 0x632   : > { %1846 = vmatmul.bf16.gmra.mxu2 %v4340_v56  ;;  %v1902_v26 = vpack.c.bf16 %v1874_v14, %v1873_v2 }
 0x635   : > { %v1807_v25 = vpop.f32.mrf.mxu2 }
 0x63d   : > { %v1809_v63 = vpop.f32.mrf.mxu2 }
 0x63e   : > { %v1810_v2 = vadd.f32 %v1809_v63, %v4345_v0 }
 0x642   : > { %1851 = vmatmul.bf16.gmra.mxu2 %v4341_v17  ;;  %v4346_v17 = vld [vmem:[#allocation5_spill] sm:$0xff] }
 0x645   : > { %v1812_v34 = vpop.f32.mrf.mxu2 }
 0x646   : > { %v1813_v22 = vadd.f32 %v1812_v34, %v3569_v12 }
 0x64d   : > { %v1814_v29 = vpop.f32.mrf.mxu2 }
 0x64e   : > { %v1815_v59 = vadd.f32 %v1814_v29, %v3574_v16 }
 0x650   : > { %v1878_v14 = vmax.f32 %v1815_v59, 0.0 }
 0x652   : > { %1856 = vmatmul.bf16.gmra.mxu2 %v4342_v30  ;;  %v1808_v30 = vadd.f32 %v1807_v25, %v4346_v17  ;;  %v3314_v25 = vld [vmem:[%s4250_s7 + $0x18] sm:$0xff] }
 0x655   : > { %v1817_v21 = vpop.f32.mrf.mxu2 }
 0x656   : > { %v1818_v10 = vadd.f32 %v1817_v21, %v3579_v20  ;;  %v1876_v21 = vmax.f32 %v1810_v2, 0.0 }
 0x658   : > { %v1879_v3 = vmax.f32 %v1818_v10, 0.0 }
 0x65d   : > { %v1819_v31 = vpop.f32.mrf.mxu2 }
 0x65e   : > { %v1820_v50 = vadd.f32 %v1819_v31, %v4344_v51  ;;  %v1877_v31 = vmax.f32 %v1813_v22, 0.0 }
 0x660   : > { %v1880_v53 = vmax.f32 %v1820_v50, 0.0 }
 0x662   : > { %1861 = vmatmul.bf16.gmra.mxu2 %v4343_v35  ;;  %v1905_v56 = vpack.c.bf16 %v1880_v53, %v1879_v3  ;;  %v1904_v35 = vpack.c.bf16 %v1878_v14, %v1877_v31  ;;  %v4349_v3 = vld [vmem:[#allocation11_spill] sm:$0xff]  ;;  %v4350_v14 = vld [vmem:[#allocation13_spill] sm:$0xff] }
 0x665   : > { %v1822_v39 = vpop.f32.mrf.mxu2 }
 0x666   : > { %v1823_v43 = vadd.f32 %v1822_v39, %v3589_v28  ;;  %v1875_v39 = vmax.f32 %v1808_v30, 0.0  ;;  %v4351_v30 = vld [vmem:[#allocation10_spill] sm:$0xff] }
 0x668   : > { %v1881_v11 = vmax.f32 %v1823_v43, 0.0  ;;  %v1903_v43 = vpack.c.bf16 %v1876_v21, %v1875_v39  ;;  %v4352_v39 = vld [vmem:[#allocation9_spill] sm:$0xff] }
 0x66d   : > { %v1824_v49 = vpop.f32.mrf.mxu2 }
 0x66e   : > { %v1825_v60 = vadd.f32 %v1824_v49, %v3594_v32  ;;  %v3315_v49 = vld [vmem:[%s4250_s7 + $0x10] sm:$0xff] }
 0x670   : > { %v1882_v1 = vmax.f32 %v1825_v60, 0.0 }
 0x672   : > { %v1906_v9 = vpack.c.bf16 %v1882_v1, %v1881_v11 }
 0x674   : > { %1915 = vmatpush.bf16.msrb.mxu3 %v1906_v9  ;;  %v4348_v9 = vld [vmem:[#allocation20_spill] sm:$0xff] }
 0x675   : > { %v3987_v5 = vpop.f32.mrf.mxu2 }
 0x678   : > { %1916 = vmatpush.bf16.msrb.mxu3 %v1905_v56 }
 0x67c   : > { %1917 = vmatpush.bf16.msrb.mxu3 %v1904_v35 }
 0x67d   : > { %v3991_v29 = vpop.f32.mrf.mxu2 }
 0x680   : > { %1918 = vmatpush.bf16.msrb.mxu3 %v1903_v43 }
 0x684   : > { %1919 = vmatpush.bf16.msrb.mxu3 %v1902_v26 }
 0x685   : > { %v3993_v34 = vpop.f32.mrf.mxu2 }
 0x688   : > { %1920 = vmatpush.bf16.msrb.mxu3 %v1901_v27 }
 0x68c   : > { %1921 = vmatpush.bf16.msrb.mxu3 %v1900_v62  ;;  %v3316_v62 = vld [vmem:[%s4250_s7 + $0x8] sm:$0xff] }
 0x68d   : > { %v3995_v63 = vpop.f32.mrf.mxu2 }
 0x690   : > { %1922 = vmatpush.bf16.msrb.mxu3 %v3967_v33  ;;  %v3317_v33 = vld [vmem:[%s4250_s7] sm:$0xff] }
 0x693   : > { %1923 = vmatmul.bf16.vlgmr.msrb.gmra.mxu3 %v3791_v57 }
 0x694   : > { %2266 = vmatpush.msra.mxu3 %v3314_v25 }
 0x695   : > { %v1837_v26 = vpop.f32.mrf.mxu2 }
 0x696   : > { %2267 = vmatpush.msra.mxu3 %v3315_v49 }
 0x698   : > { %2268 = vmatpush.msra.mxu3 %v3316_v62  ;;  %v4353_v62 = vld [vmem:[#allocation21_spill] sm:$0xff] }
 0x69a   : > { %2269 = vmatpush.msra.mxu3 %v3317_v33 }
 0x69c   : > { %2686 = vmatpush.msrb.mxu3 %v3866_v15  ;;  %v4347_v15 = vld [vmem:[#allocation19_spill] sm:$0xff] }
 0x69d   : > { %v1839_v27 = vpop.f32.mrf.mxu2 }
 0x69e   : > { %2687 = vmatpush.msrb.mxu3 %v3871_v19 }
 0x6a0   : > { %2688 = vmatpush.msrb.mxu3 %v3887_v23 }
 0x6a2   : > { %2689 = vmatpush.msrb.mxu3 %v3894_v8 }
 0x6a3   : > { %1928 = vmatmul.bf16.gmra.mxu3 %v3803_v4 }
 0x6a5   : > { %v1842_v50 = vpop.f32.mrf.mxu2 }
 0x6ad   : > { %v1844_v60 = vpop.f32.mrf.mxu2 }
 0x6b3   : > { %1933 = vmatmul.bf16.gmra.mxu3 %v3821_v55 }
 0x6b5   : > { %v1847_v10 = vpop.f32.mrf.mxu2 }
 0x6bd   : > { %v1849_v11 = vpop.f32.mrf.mxu2 }
 0x6c3   : > { %1938 = vmatmul.bf16.gmra.mxu3 %v3831_v6 }
 0x6c5   : > { %v1852_v1 = vpop.f32.mrf.mxu2 }
 0x6c6   : > { %v1853_v33 = vadd.f32 %v1852_v1, %v3630_v61  ;;  %v1840_v1 = vadd.f32 %v1839_v27, %v3618_v41  ;;  %v1830_v27 = vadd.f32 %v3991_v29, %v3603_v37  ;;  %v4359_v29 = vld [vmem:[#allocation26_spill] sm:$0xff] }
 0x6cd   : > { %v1854_v59 = vpop.f32.mrf.mxu2 }
 0x6ce   : > { %v1855_v43 = vadd.f32 %v1854_v59, %v4352_v39 }
 0x6d3   : > { %1943 = vmatmul.bf16.gmra.mxu3 %v4347_v15 }
 0x6d5   : > { %v1857_v19 = vpop.f32.mrf.mxu2 }
 0x6d6   : > { %v1858_v31 = vadd.f32 %v1857_v19, %v4351_v30  ;;  %v1845_v19 = vadd.f32 %v1844_v60, %v3623_v54  ;;  %v4354_v60 = vld [vmem:[#allocation22_spill] sm:$0xff] }
 0x6dd   : > { %v1859_v53 = vpop.f32.mrf.mxu2 }
 0x6de   : > { %v1860_v2 = vadd.f32 %v1859_v53, %v4349_v3 }
 0x6e0   : > { %v1896_v25 = vmax.f32 %v1860_v2, 0.0  ;;  %v1843_v2 = vadd.f32 %v1842_v50, %v3621_v44 }
 0x6e3   : > { %1948 = vmatmul.bf16.gmra.mxu3 %v4348_v9  ;;  %v1895_v9 = vmax.f32 %v1858_v31, 0.0  ;;  %v1890_v31 = vmax.f32 %v1845_v19, 0.0  ;;  %v4356_v19 = vld [vmem:[#allocation23_spill] sm:$0xff] }
 0x6e5   : > { %v1862_v23 = vpop.f32.mrf.mxu2  ;;  %v1913_v53 = vpack.c.bf16 %v1896_v25, %v1895_v9  ;;  %v1888_v9 = vmax.f32 %v1840_v1, 0.0 }
 0x6e6   : > { %v1863_v8 = vadd.f32 %v1862_v23, %v3639_v7  ;;  %v1850_v23 = vadd.f32 %v1849_v11, %v3628_v58  ;;  %v1894_v7 = vmax.f32 %v1855_v43, 0.0  ;;  %v1838_v11 = vadd.f32 %v1837_v26, %v3615_v36  ;;  %v4355_v26 = vld [vmem:[#allocation8_spill] sm:$0xff] }
 0x6e8   : > { %v1897_v21 = vmax.f32 %v1863_v8, 0.0  ;;  %v1892_v8 = vmax.f32 %v1850_v23, 0.0  ;;  %v1887_v50 = vmax.f32 %v1838_v11, 0.0 }
 0x6ea   : > { %v1909_v25 = vpack.c.bf16 %v1888_v9, %v1887_v50 }
 0x6ed   : > { %v1864_v22 = vpop.f32.mrf.mxu2 }
 0x6ee   : > { %v1865_v56 = vadd.f32 %v1864_v22, %v4350_v14  ;;  %v1848_v22 = vadd.f32 %v1847_v10, %v3625_v47  ;;  %v1893_v14 = vmax.f32 %v1853_v33, 0.0  ;;  %v1835_v10 = vadd.f32 %v3995_v63, %v3611_v46 }
 0x6ef   : > { %v1884_v63 = vmax.f32 %v1830_v27, 0.0 }
 0x6f0   : > { %v1898_v35 = vmax.f32 %v1865_v56, 0.0  ;;  %v1912_v59 = vpack.c.bf16 %v1894_v7, %v1893_v14  ;;  %v1891_v56 = vmax.f32 %v1848_v22, 0.0  ;;  %v1833_v7 = vadd.f32 %v3993_v34, %v3607_v40  ;;  %v4357_v34 = vld [vmem:[#allocation24_spill] sm:$0xff] }
 0x6f1   : > { %v1886_v14 = vmax.f32 %v1835_v10, 0.0 }
 0x6f2   : > { %v1914_v49 = vpack.c.bf16 %v1898_v35, %v1897_v21  ;;  %v1911_v21 = vpack.c.bf16 %v1892_v8, %v1891_v56  ;;  %v1889_v35 = vmax.f32 %v1843_v2, 0.0  ;;  %v1885_v33 = vmax.f32 %v1833_v7, 0.0  ;;  %v4358_v8 = vld [vmem:[#allocation25_spill] sm:$0xff]  ;;  %v4361_v2 = vld [vmem:[#allocation28_spill] sm:$0xff] }
 0x6f3   : > { %1953 = vmatmul.bf16.gmra.mxu3 %v4353_v62  ;;  %v4362_v56 = vld [vmem:[#allocation29_spill] sm:$0xff] }
 0x6f4   : > { %1964 = vmatpush.bf16.msrb.mxu0 %v1914_v49  ;;  %v1910_v43 = vpack.c.bf16 %v1890_v31, %v1889_v35  ;;  %v1828_v49 = vadd.f32 %v3987_v5, %v4355_v26  ;;  %v1908_v23 = vpack.c.bf16 %v1886_v14, %v1885_v33  ;;  %v4363_v31 = vld [vmem:[#allocation30_spill] sm:$0xff] }
 0x6f8   : > { %1965 = vmatpush.bf16.msrb.mxu0 %v1913_v53  ;;  %v1883_v53 = vmax.f32 %v1828_v49, 0.0 }
 0x6fa   : > { %v1907_v22 = vpack.c.bf16 %v1884_v63, %v1883_v53 }
 0x6fc   : > { %1966 = vmatpush.bf16.msrb.mxu0 %v1912_v59  ;;  %v4360_v59 = vld [vmem:[#allocation27_spill] sm:$0xff] }
 0x700   : > { %1967 = vmatpush.bf16.msrb.mxu0 %v1911_v21 }
 0x703   : > { %1958 = vmatmul.bf16.gmra.mxu3 %v4354_v60 }
 0x704   : > { %1968 = vmatpush.bf16.msrb.mxu0 %v1910_v43 }
 0x708   : > { %1969 = vmatpush.bf16.msrb.mxu0 %v1909_v25 }
 0x70c   : > { %1970 = vmatpush.bf16.msrb.mxu0 %v1908_v23 }
 0x710   : > { %1971 = vmatpush.bf16.msrb.mxu0 %v1907_v22 }
 0x713   : > { %1972 = vmatmul.bf16.vlgmr.msrb.gmra.mxu0 %v4356_v19 }
 0x716   : > { %v1924_v5 = vpop.f32.mrf.mxu3 }
 0x71e   : > { %v1926_v1 = vpop.f32.mrf.mxu3 }
 0x723   : > { %1977 = vmatmul.bf16.gmra.mxu0 %v4357_v34 }
 0x726   : > { %v1929_v21 = vpop.f32.mrf.mxu3 }
 0x72e   : > { %v1931_v35 = vpop.f32.mrf.mxu3 }
 0x733   : > { %1982 = vmatmul.bf16.gmra.mxu0 %v4358_v8 }
 0x736   : > { %v1934_v7 = vpop.f32.mrf.mxu3 }
 0x73e   : > { %v1936_v14 = vpop.f32.mrf.mxu3 }
 0x743   : > { %1987 = vmatmul.bf16.gmra.mxu0 %v4359_v29 }
 0x746   : > { %v1939_v33 = vpop.f32.mrf.mxu3 }
 0x74e   : > { %v1941_v22 = vpop.f32.mrf.mxu3 }
 0x753   : > { %1992 = vmatmul.bf16.gmra.mxu0 %v4360_v59 }
 0x763   : > { %1997 = vmatmul.bf16.gmra.mxu0 %v4361_v2 }
 0x773   : > { %2002 = vmatmul.bf16.gmra.mxu0 %v4362_v56 }
 0x783   : > { %2007 = vmatmul.bf16.gmra.mxu0 %v4363_v31 }
 0x790   : > { %v1973_v11 = vpop.f32.mrf.mxu0 }
 0x791   : > { %v1974_v10 = vadd.f32 %v1973_v11, %v1924_v5 }
 0x793   : > { %3202 = vmatmul.msk.f32.vlgmr.msrb.gmra.mxu1 %vm931_vm1, %v1974_v10 }
 0x798   : > { %v1975_v9 = vpop.f32.mrf.mxu0 }
 0x799   : > { %v1976_v43 = vadd.f32 %v1975_v9, %v1926_v1 }
 0x79b   : > { %3203 = vmatmul.msk.f32.gmra.mxu1 %vm931_vm1, %v1976_v43 }
 0x7a0   : > { %v1978_v50 = vpop.f32.mrf.mxu0 }
 0x7a1   : > { %v1979_v27 = vadd.f32 %v1978_v50, %v1929_v21  ;;  %v1944_v21 = vpop.f32.mrf.mxu3 }
 0x7a3   : > { %3204 = vmatmul.msk.f32.gmra.mxu1 %vm931_vm1, %v1979_v27 }
 0x7a8   : > { %v1980_v25 = vpop.f32.mrf.mxu0 }
 0x7a9   : > { %v1981_v49 = vadd.f32 %v1980_v25, %v1931_v35  ;;  %v1946_v35 = vpop.f32.mrf.mxu3 }
 0x7ab   : > { %3205 = vmatmul.msk.f32.gmra.mxu1 %vm931_vm1, %v1981_v49 }
 0x7b0   : > { %v1983_v63 = vpop.f32.mrf.mxu0 }
 0x7b1   : > { %v1984_v23 = vadd.f32 %v1983_v63, %v1934_v7  ;;  %v1949_v7 = vpop.f32.mrf.mxu3 }
 0x7b3   : > { %3206 = vmatmul.msk.f32.gmra.mxu1 %vm931_vm1, %v1984_v23 }
 0x7b8   : > { %v1985_v53 = vpop.f32.mrf.mxu0 }
 0x7b9   : > { %v1986_v5 = vadd.f32 %v1985_v53, %v1936_v14  ;;  %v1951_v14 = vpop.f32.mrf.mxu3 }
 0x7bb   : > { %3207 = vmatmul.msk.f32.gmra.mxu1 %vm931_vm1, %v1986_v5 }
 0x7c0   : > { %v1988_v1 = vpop.f32.mrf.mxu0 }
 0x7c1   : > { %v1989_v11 = vadd.f32 %v1988_v1, %v1939_v33  ;;  %v1954_v53 = vpop.f32.mrf.mxu3 }
 0x7c3   : > { %3208 = vmatmul.msk.f32.gmra.mxu1 %vm931_vm1, %v1989_v11 }
 0x7c8   : > { %v1990_v10 = vpop.f32.mrf.mxu0 }
 0x7c9   : > { %v1991_v9 = vadd.f32 %v1990_v10, %v1941_v22  ;;  %v1956_v1 = vpop.f32.mrf.mxu3 }
 0x7cb   : > { %3209 = vmatmul.msk.f32.gmra.mxu1 %vm931_vm1, %v1991_v9 }
 0x7d0   : > { %v1993_v43 = vpop.f32.mrf.mxu0 }
 0x7d1   : > { %v1994_v50 = vadd.f32 %v1993_v43, %v1944_v21  ;;  %v1959_v10 = vpop.f32.mrf.mxu3 }
 0x7d3   : > { %3210 = vmatmul.msk.f32.gmra.mxu1 %vm931_vm1, %v1994_v50 }
 0x7d8   : > { %v1995_v27 = vpop.f32.mrf.mxu0 }
 0x7d9   : > { %v1996_v25 = vadd.f32 %v1995_v27, %v1946_v35  ;;  %v1961_v43 = vpop.f32.mrf.mxu3  ;;  %v2030_v27 = vpop.permute.xlu1 %2029 }
 0x7db   : > { %3211 = vmatmul.msk.f32.gmra.mxu1 %vm931_vm1, %v1996_v25 }
 0x7e0   : > { %v1998_v49 = vpop.f32.mrf.mxu0 }
 0x7e1   : > { %v1999_v33 = vadd.f32 %v1998_v49, %v1949_v7 }
 0x7e3   : > { %3212 = vmatmul.msk.f32.gmra.mxu1 %vm931_vm1, %v1999_v33  ;;  %v2032_v33 = vpop.permute.xlu2 %2031 }
 0x7e8   : > { %v2000_v63 = vpop.f32.mrf.mxu0 }
 0x7e9   : > { %v2001_v23 = vadd.f32 %v2000_v63, %v1951_v14 }
 0x7eb   : > { %3213 = vmatmul.msk.f32.gmra.mxu1 %vm931_vm1, %v2001_v23 }
 0x7f0   : > { %v2003_v22 = vpop.f32.mrf.mxu0 }
 0x7f1   : > { %v2004_v5 = vadd.f32 %v2003_v22, %v1954_v53  ;;  %v2034_v22 = vpop.permute.xlu0 %2033 }
 0x7f3   : > { %3214 = vmatmul.msk.f32.gmra.mxu1 %vm931_vm1, %v2004_v5 }
 0x7f8   : > { %v2005_v11 = vpop.f32.mrf.mxu0 }
 0x7f9   : > { %v2006_v21 = vadd.f32 %v2005_v11, %v1956_v1 }
 0x7fb   : > { %3215 = vmatmul.msk.f32.gmra.mxu1 %vm931_vm1, %v2006_v21  ;;  %v2036_v21 = vpop.permute.xlu1 %2035 }
 0x800   : > { %v2008_v9 = vpop.f32.mrf.mxu0 }
 0x801   : > { %v2009_v35 = vadd.f32 %v2008_v9, %v1959_v10 }
 0x803   : > { %3216 = vmatmul.msk.f32.gmra.mxu1 %vm931_vm1, %v2009_v35 }
 0x808   : > { %v2010_v50 = vpop.f32.mrf.mxu0 }
 0x809   : > { %v2011_v7 = vadd.f32 %v2010_v50, %v1961_v43  ;;  %v2038_v43 = vpop.permute.xlu2 %2037 }
 0x80b   : > { %3217 = vmatmul.msk.f32.gmra.mxu1 %vm931_vm1, %v2011_v7 }
 0x810   : > { %v2142_v25 = vpop.f32.mrf.mxu1 }
 0x811   : > { %v2143_v14 = vadd.f32 %v2142_v25, %v2030_v27  ;;  %v2040_v25 = vpop.permute.xlu0 %2039 }
 0x813   : > { %v2190_v49 = vmax.f32 %v2143_v14, 0.0 }
 0x815   : > { %3218 = vmatmul.msk.f32.vlgmr.msra.gmra.mxu3 %vm931_vm1, %v2190_v49 }
 0x818   : > { %v2145_v63 = vpop.f32.mrf.mxu1 }
 0x819   : > { %v2146_v23 = vadd.f32 %v2145_v63, %v2032_v33  ;;  %v2042_v63 = vpop.permute.xlu1 %2041 }
 0x81b   : > { %v2191_v53 = vmax.f32 %v2146_v23, 0.0 }
 0x81d   : > { %3219 = vmatmul.msk.f32.gmra.mxu3 %vm931_vm1, %v2191_v53 }
 0x820   : > { %v2148_v5 = vpop.f32.mrf.mxu1 }
 0x821   : > { %v2149_v1 = vadd.f32 %v2148_v5, %v2034_v22  ;;  %v2044_v5 = vpop.permute.xlu2 %2043 }
 0x823   : > { %v2192_v11 = vmax.f32 %v2149_v1, 0.0 }
 0x825   : > { %3220 = vmatmul.msk.f32.gmra.mxu3 %vm931_vm1, %v2192_v11 }
 0x828   : > { %v2151_v10 = vpop.f32.mrf.mxu1 }
 0x829   : > { %v2152_v9 = vadd.f32 %v2151_v10, %v2036_v21  ;;  %v2046_v10 = vpop.permute.xlu0 %2045 }
 0x82b   : > { %v2193_v35 = vmax.f32 %v2152_v9, 0.0 }
 0x82d   : > { %3221 = vmatmul.msk.f32.gmra.mxu3 %vm931_vm1, %v2193_v35 }
 0x830   : > { %v2154_v50 = vpop.f32.mrf.mxu1 }
 0x831   : > { %v2155_v7 = vadd.f32 %v2154_v50, %v2038_v43  ;;  %v2048_v50 = vpop.permute.xlu1 %2047 }
 0x833   : > { %v2194_v27 = vmax.f32 %v2155_v7, 0.0 }
 0x835   : > { %3222 = vmatmul.msk.f32.gmra.mxu3 %vm931_vm1, %v2194_v27 }
 0x838   : > { %v2157_v14 = vpop.f32.mrf.mxu1 }
 0x839   : > { %v2158_v49 = vadd.f32 %v2157_v14, %v2040_v25  ;;  %v2050_v14 = vpop.permute.xlu2 %2049 }
 0x83b   : > { %v2195_v33 = vmax.f32 %v2158_v49, 0.0 }
 0x83d   : > { %3223 = vmatmul.msk.f32.gmra.mxu3 %vm931_vm1, %v2195_v33 }
 0x840   : > { %v2160_v23 = vpop.f32.mrf.mxu1 }
 0x841   : > { %v2161_v53 = vadd.f32 %v2160_v23, %v2042_v63  ;;  %v2052_v23 = vpop.permute.xlu0 %2051 }
 0x843   : > { %v2196_v22 = vmax.f32 %v2161_v53, 0.0 }
 0x845   : > { %3224 = vmatmul.msk.f32.gmra.mxu3 %vm931_vm1, %v2196_v22 }
 0x848   : > { %v2163_v1 = vpop.f32.mrf.mxu1 }
 0x849   : > { %v2164_v11 = vadd.f32 %v2163_v1, %v2044_v5  ;;  %v2054_v1 = vpop.permute.xlu1 %2053 }
 0x84b   : > { %v2197_v21 = vmax.f32 %v2164_v11, 0.0 }
 0x84d   : > { %3225 = vmatmul.msk.f32.gmra.mxu3 %vm931_vm1, %v2197_v21 }
 0x850   : > { %v2166_v9 = vpop.f32.mrf.mxu1 }
 0x851   : > { %v2167_v35 = vadd.f32 %v2166_v9, %v2046_v10  ;;  %v2056_v9 = vpop.permute.xlu2 %2055 }
 0x853   : > { %v2198_v43 = vmax.f32 %v2167_v35, 0.0 }
 0x855   : > { %3226 = vmatmul.msk.f32.gmra.mxu3 %vm931_vm1, %v2198_v43 }
 0x858   : > { %v2169_v7 = vpop.f32.mrf.mxu1 }
 0x859   : > { %v2170_v27 = vadd.f32 %v2169_v7, %v2048_v50  ;;  %v2058_v7 = vpop.permute.xlu0 %2057 }
 0x85b   : > { %v2199_v25 = vmax.f32 %v2170_v27, 0.0 }
 0x85d   : > { %3227 = vmatmul.msk.f32.gmra.mxu3 %vm931_vm1, %v2199_v25 }
 0x860   : > { %v2172_v49 = vpop.f32.mrf.mxu1 }
 0x861   : > { %v2173_v33 = vadd.f32 %v2172_v49, %v2050_v14  ;;  %v2060_v49 = vpop.permute.xlu1 %2059 }
 0x863   : > { %v2200_v63 = vmax.f32 %v2173_v33, 0.0 }
 0x865   : > { %3228 = vmatmul.msk.f32.gmra.mxu3 %vm931_vm1, %v2200_v63 }
 0x868   : > { %v2175_v53 = vpop.f32.mrf.mxu1 }
 0x869   : > { %v2176_v22 = vadd.f32 %v2175_v53, %v2052_v23 }
 0x86b   : > { %v2201_v5 = vmax.f32 %v2176_v22, 0.0 }
 0x86d   : > { %3229 = vmatmul.msk.f32.gmra.mxu3 %vm931_vm1, %v2201_v5 }
 0x870   : > { %v2178_v11 = vpop.f32.mrf.mxu1 }
 0x871   : > { %v2179_v21 = vadd.f32 %v2178_v11, %v2054_v1 }
 0x873   : > { %v2202_v10 = vmax.f32 %v2179_v21, 0.0 }
 0x875   : > { %3230 = vmatmul.msk.f32.gmra.mxu3 %vm931_vm1, %v2202_v10 }
 0x878   : > { %v2181_v35 = vpop.f32.mrf.mxu1 }
 0x879   : > { %v2182_v43 = vadd.f32 %v2181_v35, %v2056_v9 }
 0x87b   : > { %v2203_v50 = vmax.f32 %v2182_v43, 0.0 }
 0x87d   : > { %3231 = vmatmul.msk.f32.gmra.mxu3 %vm931_vm1, %v2203_v50 }
 0x880   : > { %v2184_v27 = vpop.f32.mrf.mxu1 }
 0x881   : > { %v2185_v25 = vadd.f32 %v2184_v27, %v2058_v7 }
 0x883   : > { %v2204_v14 = vmax.f32 %v2185_v25, 0.0 }
 0x885   : > { %3232 = vmatmul.msk.f32.gmra.mxu3 %vm931_vm1, %v2204_v14 }
 0x888   : > { %v2187_v33 = vpop.f32.mrf.mxu1 }
 0x889   : > { %v2188_v63 = vadd.f32 %v2187_v33, %v2060_v49 }
 0x88b   : > { %v2205_v23 = vmax.f32 %v2188_v63, 0.0 }
 0x88d   : > { %3233 = vmatmul.msk.f32.gmra.mxu3 %vm931_vm1, %v2205_v23 }
 0x898   : > { %v2271_v53 = vpop.f32.mrf.mxu3 }
 0x8a0   : > { %v2274_v22 = vpop.f32.mrf.mxu3 }
 0x8a8   : > { %v2277_v5 = vpop.f32.mrf.mxu3 }
 0x8b0   : > { %v2280_v1 = vpop.f32.mrf.mxu3 }
 0x8b8   : > { %v2283_v11 = vpop.f32.mrf.mxu3 }
 0x8c0   : > { %v2286_v21 = vpop.f32.mrf.mxu3 }
 0x8c8   : > { %v2289_v10 = vpop.f32.mrf.mxu3 }
 0x8d0   : > { %v2292_v9 = vpop.f32.mrf.mxu3 }
 0x8d8   : > { %v2295_v35 = vpop.f32.mrf.mxu3 }
 0x8e0   : > { %v2298_v43 = vpop.f32.mrf.mxu3 }
 0x8e1   : > { %v2323_v31 = vpack.c.bf16 %v2298_v43, %v2295_v35 }
 0x8e8   : > { %v2301_v50 = vpop.f32.mrf.mxu3 }
 0x8e9   : > { %2598 = vrot.lane.b32.xlu0 %v2301_v50, %s3342_s27 }
 0x8f0   : > { %v2304_v7 = vpop.f32.mrf.mxu3 }
 0x8f1   : > { %2600 = vrot.lane.b32.xlu1 %v2304_v7, %s3342_s27  ;;  %v2324_v23 = vpack.c.bf16 %v2304_v7, %v2301_v50  ;;  %v2320_v50 = vpack.c.bf16 %v2280_v1, %v2277_v5 }
 0x8f8   : > { %v2307_v27 = vpop.f32.mrf.mxu3 }
 0x8f9   : > { %2602 = vrot.lane.b32.xlu1 %v2307_v27, %s3342_s27 }
 0x900   : > { %v2310_v25 = vpop.f32.mrf.mxu3 }
 0x901   : > { %2590 = vrot.lane.b32.xlu1 %v2289_v10, %s3342_s27  ;;  %2604 = vrot.lane.b32.xlu2 %v2310_v25, %s3342_s27  ;;  %v2325_v63 = vpack.c.bf16 %v2310_v25, %v2307_v27  ;;  %v2321_v27 = vpack.c.bf16 %v2286_v21, %v2283_v11 }
 0x908   : > { %v2313_v14 = vpop.f32.mrf.mxu3 }
 0x909   : > { %2588 = vrot.lane.b32.xlu1 %v2286_v21, %s3342_s27  ;;  %2606 = vrot.lane.b32.xlu2 %v2313_v14, %s3342_s27  ;;  %v3323_v21 = vld [vmem:[%s3654_s12 + $0x28] sm:$0xff] }
 0x910   : > { %v2316_v49 = vpop.f32.mrf.mxu3 }
 0x911   : > { %v2326_v33 = vpack.c.bf16 %v2316_v49, %v2313_v14  ;;  %2578 = vrot.lane.b32.xlu1 %v2271_v53, %s3342_s27  ;;  %2594 = vrot.lane.b32.xlu2 %v2295_v35, %s3342_s27  ;;  %v2322_v14 = vpack.c.bf16 %v2292_v9, %v2289_v10  ;;  %v3318_v10 = vld [vmem:[%s3654_s12] sm:$0xff]  ;;  %v3320_v35 = vld [vmem:[%s3654_s12 + $0x10] sm:$0xff] }
 0x912   : > { %2608 = vrot.lane.b32.xlu0 %v2316_v49, %s3342_s27 }
 0x913   : > { %2327 = vmatpush.bf16.msra.mxu0 %v2326_v33 }
 0x917   : > { %2328 = vmatpush.bf16.msra.mxu0 %v2325_v63 }
 0x919   : > { %2592 = vrot.lane.b32.xlu2 %v2292_v9, %s3342_s27  ;;  %v3319_v9 = vld [vmem:[%s3654_s12 + $0x8] sm:$0xff] }
 0x91a   : > { %2596 = vrot.lane.b32.xlu0 %v2298_v43, %s3342_s27  ;;  %v3325_v43 = vld [vmem:[%s3654_s12 + $0x38] sm:$0xff] }
 0x91b   : > { %2329 = vmatpush.bf16.msra.mxu0 %v2324_v23 }
 0x91f   : > { %2330 = vmatpush.bf16.msra.mxu0 %v2323_v31  ;;  %v2319_v31 = vpack.c.bf16 %v2274_v22, %v2271_v53 }
 0x921   : > { %2582 = vrot.lane.b32.xlu2 %v2277_v5, %s3342_s27  ;;  %v3322_v5 = vld [vmem:[%s3654_s12 + $0x20] sm:$0xff] }
 0x922   : > { %2586 = vrot.lane.b32.xlu0 %v2283_v11, %s3342_s27  ;;  %v3321_v11 = vld [vmem:[%s3654_s12 + $0x18] sm:$0xff] }
 0x923   : > { %2331 = vmatpush.bf16.msra.mxu0 %v2322_v14 }
 0x927   : > { %2332 = vmatpush.bf16.msra.mxu0 %v2321_v27  ;;  %v3327_v27 = vld [vmem:[%s3654_s12 + $0x48] sm:$0xff] }
 0x929   : > { %2580 = vrot.lane.b32.xlu2 %v2274_v22, %s3342_s27  ;;  %v3326_v22 = vld [vmem:[%s3654_s12 + $0x40] sm:$0xff] }
 0x92a   : > { %2584 = vrot.lane.b32.xlu0 %v2280_v1, %s3342_s27  ;;  %v3324_v1 = vld [vmem:[%s3654_s12 + $0x30] sm:$0xff] }
 0x92b   : > { %2333 = vmatpush.bf16.msra.mxu0 %v2320_v50 }
 0x92f   : > { %2334 = vmatpush.bf16.msra.mxu0 %v2319_v31 }
 0x932   : > { %2335 = vmatmul.bf16.vlgmr.msra.gmra.mxu0 %v3318_v10 }
 0x942   : > { %2340 = vmatmul.bf16.gmra.mxu0 %v3319_v9 }
 0x952   : > { %2345 = vmatmul.bf16.gmra.mxu0 %v3320_v35 }
 0x962   : > { %2350 = vmatmul.bf16.gmra.mxu0 %v3321_v11 }
 0x972   : > { %2355 = vmatmul.bf16.gmra.mxu0 %v3322_v5  ;;  %v3328_v5 = vld [vmem:[%s3654_s12 + $0x50] sm:$0xff] }
 0x982   : > { %2360 = vmatmul.bf16.gmra.mxu0 %v3323_v21 }
 0x992   : > { %2365 = vmatmul.bf16.gmra.mxu0 %v3324_v1 }
 0x9a2   : > { %2370 = vmatmul.bf16.gmra.mxu0 %v3325_v43 }
 0x9af   : > { %v2336_v53 = vpop.f32.mrf.mxu0 }
 0x9b0   : > { %v2337_v7 = vadd.f32 %v2336_v53, %v3514_v38 }
 0x9b2   : > { %2375 = vmatmul.bf16.gmra.mxu0 %v3326_v22  ;;  %v2416_v33 = vmax.f32 %v2337_v7, 0.0  ;;  %v3329_v7 = vld [vmem:[%s3654_s12 + $0x58] sm:$0xff] }
 0x9b7   : > { %v2338_v25 = vpop.f32.mrf.mxu0 }
 0x9b8   : > { %v2339_v49 = vadd.f32 %v2338_v25, %v3523_v42 }
 0x9ba   : > { %v2417_v63 = vmax.f32 %v2339_v49, 0.0 }
 0x9bc   : > { %v4109_v23 = vpack.c.bf16 %v2417_v63, %v2416_v33 }
 0x9bf   : > { %v2341_v14 = vpop.f32.mrf.mxu0 }
 0x9c0   : > { %v2342_v50 = vadd.f32 %v2341_v14, %v3529_v45 }
 0x9c2   : > { %2380 = vmatmul.bf16.gmra.mxu0 %v3327_v27  ;;  %v2418_v9 = vmax.f32 %v2342_v50, 0.0  ;;  %v3330_v27 = vld [vmem:[%s3654_s12 + $0x60] sm:$0xff] }
 0x9c7   : > { %v2343_v31 = vpop.f32.mrf.mxu0 }
 0x9c8   : > { %v2344_v10 = vadd.f32 %v2343_v31, %v3535_v48  ;;  %v3331_v31 = vld [vmem:[%s3654_s12 + $0x68] sm:$0xff] }
 0x9ca   : > { %v2419_v35 = vmax.f32 %v2344_v10, 0.0 }
 0x9cc   : > { %v4114_v38 = vpack.c.bf16 %v2419_v35, %v2418_v9  ;;  %v3332_v35 = vld [vmem:[%s3654_s12 + $0x70] sm:$0xff] }
 0x9cf   : > { %v2346_v11 = vpop.f32.mrf.mxu0 }
 0x9d0   : > { %v2347_v42 = vadd.f32 %v2346_v11, %v3539_v52 }
 0x9d2   : > { %2385 = vmatmul.bf16.gmra.mxu0 %v3328_v5  ;;  %v2420_v43 = vmax.f32 %v2347_v42, 0.0  ;;  %v3333_v5 = vld [vmem:[%s3654_s12 + $0x78] sm:$0xff] }
 0x9d7   : > { %v2348_v21 = vpop.f32.mrf.mxu0 }
 0x9d8   : > { %v2349_v1 = vadd.f32 %v2348_v21, %v4336_v24 }
 0x9da   : > { %v2421_v53 = vmax.f32 %v2349_v1, 0.0 }
 0x9dc   : > { %v2450_v45 = vpack.c.bf16 %v2421_v53, %v2420_v43 }
 0x9df   : > { %v2351_v22 = vpop.f32.mrf.mxu0 }
 0x9e0   : > { %v2352_v48 = vadd.f32 %v2351_v22, %v4338_v18 }
 0x9e2   : > { %2390 = vmatmul.bf16.gmra.mxu0 %v3329_v7  ;;  %v2422_v33 = vmax.f32 %v2352_v48, 0.0 }
 0x9e7   : > { %v2353_v25 = vpop.f32.mrf.mxu0 }
 0x9e8   : > { %v2354_v49 = vadd.f32 %v2353_v25, %v4339_v13 }
 0x9ea   : > { %v2423_v52 = vmax.f32 %v2354_v49, 0.0 }
 0x9ec   : > { %v2451_v63 = vpack.c.bf16 %v2423_v52, %v2422_v33 }
 0x9ef   : > { %v2356_v14 = vpop.f32.mrf.mxu0 }
 0x9f2   : > { %2395 = vmatmul.bf16.gmra.mxu0 %v3330_v27 }
 0x9f7   : > { %v2358_v24 = vpop.f32.mrf.mxu0 }
 0x9ff   : > { %v2361_v50 = vpop.f32.mrf.mxu0 }
 0xa00   : > { %v2362_v49 = vadd.f32 %v2361_v50, %v3569_v12 }
 0xa02   : > { %2400 = vmatmul.bf16.gmra.mxu0 %v3331_v31 }
 0xa07   : > { %v2363_v10 = vpop.f32.mrf.mxu0 }
 0xa08   : > { %v2364_v7 = vadd.f32 %v2363_v10, %v3574_v16 }
 0xa0a   : > { %v2427_v27 = vmax.f32 %v2364_v7, 0.0 }
 0xa0f   : > { %v2366_v9 = vpop.f32.mrf.mxu0 }
 0xa10   : > { %v2367_v43 = vadd.f32 %v2366_v9, %v3579_v20 }
 0xa12   : > { %2405 = vmatmul.bf16.gmra.mxu0 %v3332_v35  ;;  %v2428_v33 = vmax.f32 %v2367_v43, 0.0 }
 0xa17   : > { %v2368_v11 = vpop.f32.mrf.mxu0 }
 0xa18   : > { %v2369_v21 = vadd.f32 %v2368_v11, %v4344_v51  ;;  %v2357_v51 = vadd.f32 %v2356_v14, %v4346_v17 }
 0xa1a   : > { %v2429_v48 = vmax.f32 %v2369_v21, 0.0  ;;  %v2424_v35 = vmax.f32 %v2357_v51, 0.0 }
 0xa1c   : > { %v2454_v31 = vpack.c.bf16 %v2429_v48, %v2428_v33  ;;  %v4364_v33 = vld [vmem:[#allocation20_spill] sm:$0xff] }
 0xa1f   : > { %v2371_v18 = vpop.f32.mrf.mxu0 }
 0xa20   : > { %v2372_v13 = vadd.f32 %v2371_v18, %v3589_v28  ;;  %v2359_v28 = vadd.f32 %v2358_v24, %v4345_v0 }
 0xa22   : > { %2410 = vmatmul.bf16.gmra.mxu0 %v3333_v5  ;;  %v2430_v53 = vmax.f32 %v2372_v13, 0.0  ;;  %v2425_v20 = vmax.f32 %v2359_v28, 0.0 }
 0xa24   : > { %v2452_v11 = vpack.c.bf16 %v2425_v20, %v2424_v35 }
 0xa27   : > { %v2373_v42 = vpop.f32.mrf.mxu0 }
 0xa28   : > { %v2374_v1 = vadd.f32 %v2373_v42, %v3594_v32  ;;  %v2426_v32 = vmax.f32 %v2362_v49, 0.0 }
 0xa2a   : > { %v2431_v22 = vmax.f32 %v2374_v1, 0.0  ;;  %v2453_v9 = vpack.c.bf16 %v2427_v27, %v2426_v32 }
 0xa2c   : > { %v2455_v25 = vpack.c.bf16 %v2431_v22, %v2430_v53 }
 0xa2e   : > { %2464 = vmatpush.bf16.msra.mxu1 %v2455_v25 }
 0xa2f   : > { %v2376_v52 = vpop.f32.mrf.mxu0 }
 0xa30   : > { %v2377_v16 = vadd.f32 %v2376_v52, %v4355_v26  ;;  %v4365_v52 = vld [vmem:[#allocation12_spill] sm:$0xff] }
 0xa32   : > { %2465 = vmatpush.bf16.msra.mxu1 %v2454_v31  ;;  %v2432_v50 = vmax.f32 %v2377_v16, 0.0  ;;  %v4366_v31 = vld [vmem:[#allocation13_spill] sm:$0xff] }
 0xa36   : > { %2466 = vmatpush.bf16.msra.mxu1 %v2453_v9 }
 0xa37   : > { %v2378_v10 = vpop.f32.mrf.mxu0 }
 0xa38   : > { %v2379_v12 = vadd.f32 %v2378_v10, %v3603_v37 }
 0xa3a   : > { %v2433_v18 = vmax.f32 %v2379_v12, 0.0  ;;  %2467 = vmatpush.bf16.msra.mxu1 %v2452_v11 }
 0xa3c   : > { %v4136_v0 = vpack.c.bf16 %v2433_v18, %v2432_v50 }
 0xa3e   : > { %2468 = vmatpush.bf16.msra.mxu1 %v2451_v63 }
 0xa3f   : > { %v2381_v24 = vpop.f32.mrf.mxu0 }
 0xa40   : > { %v2382_v17 = vadd.f32 %v2381_v24, %v3607_v40 }
 0xa42   : > { %2469 = vmatpush.bf16.msra.mxu1 %v2450_v45  ;;  %v2434_v5 = vmax.f32 %v2382_v17, 0.0 }
 0xa46   : > { %2470 = vmatpush.bf16.msra.mxu1 %v4114_v38 }
 0xa47   : > { %v2383_v14 = vpop.f32.mrf.mxu0 }
 0xa48   : > { %v2384_v26 = vadd.f32 %v2383_v14, %v3611_v46 }
 0xa4a   : > { %v2435_v13 = vmax.f32 %v2384_v26, 0.0  ;;  %2471 = vmatpush.bf16.msra.mxu1 %v4109_v23 }
 0xa4c   : > { %v2457_v37 = vpack.c.bf16 %v2435_v13, %v2434_v5 }
 0xa4d   : > { %2472 = vmatmul.bf16.vlgmr.msra.gmra.mxu1 %v3791_v57 }
 0xa4f   : > { %v2386_v42 = vpop.f32.mrf.mxu0 }
 0xa50   : > { %v2387_v21 = vadd.f32 %v2386_v42, %v3615_v36 }
 0xa52   : > { %v2436_v1 = vmax.f32 %v2387_v21, 0.0 }
 0xa57   : > { %v2388_v63 = vpop.f32.mrf.mxu0 }
 0xa58   : > { %v2389_v45 = vadd.f32 %v2388_v63, %v3618_v41 }
 0xa5a   : > { %v2437_v40 = vmax.f32 %v2389_v45, 0.0 }
 0xa5c   : > { %v2458_v43 = vpack.c.bf16 %v2437_v40, %v2436_v1 }
 0xa5d   : > { %2477 = vmatmul.bf16.gmra.mxu1 %v3803_v4 }
 0xa5f   : > { %v2391_v38 = vpop.f32.mrf.mxu0 }
 0xa60   : > { %v2392_v46 = vadd.f32 %v2391_v38, %v3621_v44 }
 0xa62   : > { %v2438_v22 = vmax.f32 %v2392_v46, 0.0 }
 0xa67   : > { %v2393_v53 = vpop.f32.mrf.mxu0 }
 0xa68   : > { %v2394_v23 = vadd.f32 %v2393_v53, %v3623_v54 }
 0xa6a   : > { %v2439_v7 = vmax.f32 %v2394_v23, 0.0 }
 0xa6c   : > { %v2459_v57 = vpack.c.bf16 %v2439_v7, %v2438_v22 }
 0xa6d   : > { %2482 = vmatmul.bf16.gmra.mxu1 %v3821_v55 }
 0xa6f   : > { %v2396_v36 = vpop.f32.mrf.mxu0 }
 0xa70   : > { %v2397_v12 = vadd.f32 %v2396_v36, %v3625_v47 }
 0xa72   : > { %v2440_v24 = vmax.f32 %v2397_v12, 0.0 }
 0xa77   : > { %v2398_v48 = vpop.f32.mrf.mxu0 }
 0xa78   : > { %v2399_v10 = vadd.f32 %v2398_v48, %v3628_v58 }
 0xa7d   : > { %2487 = vmatmul.bf16.gmra.mxu1 %v3831_v6 }
 0xa7f   : > { %v2401_v41 = vpop.f32.mrf.mxu0 }
 0xa80   : > { %v2402_v35 = vadd.f32 %v2401_v41, %v3630_v61  ;;  %v4367_v61 = vld [vmem:[#allocation30_spill] sm:$0xff] }
 0xa82   : > { %v2442_v50 = vmax.f32 %v2402_v35, 0.0 }
 0xa87   : > { %v2403_v25 = vpop.f32.mrf.mxu0 }
 0xa88   : > { %v2404_v20 = vadd.f32 %v2403_v25, %v4352_v39 }
 0xa8a   : > { %v2443_v11 = vmax.f32 %v2404_v20, 0.0 }
 0xa8c   : > { %v2461_v18 = vpack.c.bf16 %v2443_v11, %v2442_v50 }
 0xa8d   : > { %2492 = vmatmul.bf16.gmra.mxu1 %v4347_v15 }
 0xa8f   : > { %v2406_v4 = vpop.f32.mrf.mxu0 }
 0xa90   : > { %v2407_v51 = vadd.f32 %v2406_v4, %v4351_v30  ;;  %v2441_v30 = vmax.f32 %v2399_v10, 0.0 }
 0xa92   : > { %v2444_v16 = vmax.f32 %v2407_v51, 0.0  ;;  %v2460_v39 = vpack.c.bf16 %v2441_v30, %v2440_v24 }
 0xa97   : > { %v2408_v49 = vpop.f32.mrf.mxu0 }
 0xa98   : > { %v2409_v27 = vadd.f32 %v2408_v49, %v4349_v3  ;;  %v4183_v49 = vpop.permute.xlu2 %2604 }
 0xa9a   : > { %v2445_v9 = vmax.f32 %v2409_v27, 0.0 }
 0xa9c   : > { %v2462_v3 = vpack.c.bf16 %v2445_v9, %v2444_v16  ;;  %v2599_v9 = vpop.permute.xlu0 %2598 }
 0xa9d   : > { %2497 = vmatmul.bf16.gmra.mxu1 %v4364_v33 }
 0xa9f   : > { %v2411_v44 = vpop.f32.mrf.mxu0 }
 0xaa0   : > { %v2412_v54 = vadd.f32 %v2411_v44, %v4365_v52  ;;  %v4185_v52 = vpop.permute.xlu1 %2600 }
 0xaa2   : > { %v2446_v32 = vmax.f32 %v2412_v54, 0.0 }
 0xaa7   : > { %v2413_v28 = vpop.f32.mrf.mxu0 }
 0xaa8   : > { %v2414_v55 = vadd.f32 %v2413_v28, %v4366_v31  ;;  %v2607_v28 = vpop.permute.xlu2 %2606 }
 0xaaa   : > { %v2447_v6 = vmax.f32 %v2414_v55, 0.0  ;;  %v2603_v55 = vpop.permute.xlu1 %2602 }
 0xaac   : > { %v2463_v15 = vpack.c.bf16 %v2447_v6, %v2446_v32 }
 0xaad   : > { %2502 = vmatmul.bf16.gmra.mxu1 %v4353_v62 }
 0xaae   : > { %2513 = vmatpush.bf16.msra.mxu2 %v2463_v15 }
 0xab0   : > { %v4189_v32 = vpop.permute.xlu2 %2594 }
 0xab2   : > { %2514 = vmatpush.bf16.msra.mxu2 %v2462_v3  ;;  %v2591_v15 = vpop.permute.xlu1 %2590  ;;  %v2609_v3 = vpop.permute.xlu0 %2608 }
 0xab6   : > { %2515 = vmatpush.bf16.msra.mxu2 %v2461_v18 }
 0xab8   : > { %v2593_v11 = vpop.permute.xlu2 %2592 }
 0xaba   : > { %2516 = vmatpush.bf16.msra.mxu2 %v2460_v39  ;;  %v2589_v12 = vpop.permute.xlu1 %2588  ;;  %v2597_v18 = vpop.permute.xlu0 %2596 }
 0xabd   : > { %2507 = vmatmul.bf16.gmra.mxu1 %v4354_v60 }
 0xabe   : > { %2517 = vmatpush.bf16.msra.mxu2 %v2459_v57 }
 0xac0   : > { %v2583_v50 = vpop.permute.xlu2 %2582 }
 0xac2   : > { %2518 = vmatpush.bf16.msra.mxu2 %v2458_v43  ;;  %v2579_v24 = vpop.permute.xlu1 %2578 }
 0xac6   : > { %2519 = vmatpush.bf16.msra.mxu2 %v2457_v37 }
 0xaca   : > { %2520 = vmatpush.bf16.msra.mxu2 %v4136_v0  ;;  %v2473_v47 = vpop.f32.mrf.mxu1 }
 0xacd   : > { %2521 = vmatmul.bf16.vlgmr.msra.gmra.mxu2 %v4356_v19 }
 0xad2   : > { %v2475_v58 = vpop.f32.mrf.mxu1 }
 0xada   : > { %v2478_v62 = vpop.f32.mrf.mxu1 }
 0xadd   : > { %2526 = vmatmul.bf16.gmra.mxu2 %v4357_v34 }
 0xae2   : > { %v2480_v0 = vpop.f32.mrf.mxu1 }
 0xaea   : > { %v2483_v17 = vpop.f32.mrf.mxu1 }
 0xaed   : > { %2531 = vmatmul.bf16.gmra.mxu2 %v4358_v8 }
 0xafd   : > { %2536 = vmatmul.bf16.gmra.mxu2 %v4359_v29 }
 0xb0d   : > { %2541 = vmatmul.bf16.gmra.mxu2 %v4360_v59 }
 0xb1d   : > { %2546 = vmatmul.bf16.gmra.mxu2 %v4361_v2  ;;  %v2485_v2 = vpop.f32.mrf.mxu1 }
 0xb25   : > { %v2488_v26 = vpop.f32.mrf.mxu1 }
 0xb2d   : > { %2551 = vmatmul.bf16.gmra.mxu2 %v4362_v56  ;;  %v2490_v42 = vpop.f32.mrf.mxu1 }
 0xb35   : > { %v2493_v1 = vpop.f32.mrf.mxu1 }
 0xb3d   : > { %2556 = vmatmul.bf16.gmra.mxu2 %v4367_v61  ;;  %v2495_v38 = vpop.f32.mrf.mxu1 }
 0xb45   : > { %v2498_v23 = vpop.f32.mrf.mxu1 }
 0xb4d   : > { %v2500_v36 = vpop.f32.mrf.mxu1 }
 0xb50   : > { %v2522_v60 = vpop.f32.mrf.mxu2 }
 0xb51   : > { %v2523_v19 = vadd.f32 %v2522_v60, %v2473_v47  ;;  %v2581_v47 = vpop.permute.xlu2 %2580 }
 0xb53   : > { %3234 = vmatmul.msk.f32.vlgmr.msrb.gmra.mxu3 %vm931_vm1, %v2523_v19  ;;  %v2587_v19 = vpop.permute.xlu0 %2586 }
 0xb55   : > { %v2503_v4 = vpop.f32.mrf.mxu1 }
 0xb58   : > { %v2524_v34 = vpop.f32.mrf.mxu2 }
 0xb59   : > { %v2525_v8 = vadd.f32 %v2524_v34, %v2475_v58 }
 0xb5b   : > { %3235 = vmatmul.msk.f32.gmra.mxu3 %vm931_vm1, %v2525_v8 }
 0xb5d   : > { %v2505_v54 = vpop.f32.mrf.mxu1 }
 0xb60   : > { %v2527_v29 = vpop.f32.mrf.mxu2 }
 0xb61   : > { %v2528_v59 = vadd.f32 %v2527_v29, %v2478_v62 }
 0xb63   : > { %3236 = vmatmul.msk.f32.gmra.mxu3 %vm931_vm1, %v2528_v59 }
 0xb65   : > { %v2508_v51 = vpop.f32.mrf.mxu1 }
 0xb68   : > { %v2529_v56 = vpop.f32.mrf.mxu2 }
 0xb69   : > { %v2530_v14 = vadd.f32 %v2529_v56, %v2480_v0 }
 0xb6b   : > { %3237 = vmatmul.msk.f32.gmra.mxu3 %vm931_vm1, %v2530_v14 }
 0xb6d   : > { %v2510_v35 = vpop.f32.mrf.mxu1 }
 0xb70   : > { %v2532_v5 = vpop.f32.mrf.mxu2 }
 0xb71   : > { %v2533_v13 = vadd.f32 %v2532_v5, %v2483_v17  ;;  %v2585_v17 = vpop.permute.xlu0 %2584 }
 0xb73   : > { %3238 = vmatmul.msk.f32.gmra.mxu3 %vm931_vm1, %v2533_v13 }
 0xb78   : > { %v2534_v37 = vpop.f32.mrf.mxu2 }
 0xb79   : > { %v2535_v21 = vadd.f32 %v2534_v37, %v2485_v2 }
 0xb7b   : > { %3239 = vmatmul.msk.f32.gmra.mxu3 %vm931_vm1, %v2535_v21 }
 0xb80   : > { %v2537_v63 = vpop.f32.mrf.mxu2 }
 0xb81   : > { %v2538_v45 = vadd.f32 %v2537_v63, %v2488_v26 }
 0xb83   : > { %3240 = vmatmul.msk.f32.gmra.mxu3 %vm931_vm1, %v2538_v45 }
 0xb88   : > { %v2539_v40 = vpop.f32.mrf.mxu2 }
 0xb89   : > { %v2540_v43 = vadd.f32 %v2539_v40, %v2490_v42 }
 0xb8b   : > { %3241 = vmatmul.msk.f32.gmra.mxu3 %vm931_vm1, %v2540_v43 }
 0xb90   : > { %v2542_v46 = vpop.f32.mrf.mxu2 }
 0xb91   : > { %v2543_v53 = vadd.f32 %v2542_v46, %v2493_v1 }
 0xb93   : > { %3242 = vmatmul.msk.f32.gmra.mxu3 %vm931_vm1, %v2543_v53 }
 0xb98   : > { %v2544_v22 = vpop.f32.mrf.mxu2 }
 0xb99   : > { %v2545_v7 = vadd.f32 %v2544_v22, %v2495_v38 }
 0xb9b   : > { %3243 = vmatmul.msk.f32.gmra.mxu3 %vm931_vm1, %v2545_v7 }
 0xba0   : > { %v2547_v57 = vpop.f32.mrf.mxu2 }
 0xba1   : > { %v2548_v48 = vadd.f32 %v2547_v57, %v2498_v23 }
 0xba3   : > { %3244 = vmatmul.msk.f32.gmra.mxu3 %vm931_vm1, %v2548_v48 }
 0xba8   : > { %v2549_v41 = vpop.f32.mrf.mxu2 }
 0xba9   : > { %v2550_v25 = vadd.f32 %v2549_v41, %v2500_v36 }
 0xbab   : > { %3245 = vmatmul.msk.f32.gmra.mxu3 %vm931_vm1, %v2550_v25 }
 0xbb0   : > { %v2552_v33 = vpop.f32.mrf.mxu2 }
 0xbb1   : > { %v2553_v44 = vadd.f32 %v2552_v33, %v2503_v4 }
 0xbb3   : > { %3246 = vmatmul.msk.f32.gmra.mxu3 %vm931_vm1, %v2553_v44 }
 0xbb8   : > { %v2554_v27 = vpop.f32.mrf.mxu2 }
 0xbb9   : > { %v2555_v31 = vadd.f32 %v2554_v27, %v2505_v54 }
 0xbbb   : > { %3247 = vmatmul.msk.f32.gmra.mxu3 %vm931_vm1, %v2555_v31 }
 0xbc0   : > { %v2557_v6 = vpop.f32.mrf.mxu2 }
 0xbc1   : > { %v2558_v20 = vadd.f32 %v2557_v6, %v2508_v51 }
 0xbc3   : > { %3248 = vmatmul.msk.f32.gmra.mxu3 %vm931_vm1, %v2558_v20 }
 0xbc8   : > { %v2559_v16 = vpop.f32.mrf.mxu2 }
 0xbc9   : > { %v2560_v10 = vadd.f32 %v2559_v16, %v2510_v35  ;;  %v540_v35 = vld [vmem:[%s4252_s9 + $0x30] sm:$0xff] }
 0xbcb   : > { %3249 = vmatmul.msk.f32.gmra.mxu3 %vm931_vm1, %v2560_v10 }
 0xbd6   : > { %v2691_v30 = vpop.f32.mrf.mxu3 }
 0xbd7   : > { %v2692_v39 = vadd.f32 %v2691_v30, %v2579_v24 }
 0xbd9   : > { %v2739_v62 = vmax.f32 %v2692_v39, 0.0  ;;  %v536_v39 = vld [vmem:[%s4252_s9 + $0x10] sm:$0xff] }
 0xbde   : > { %v2694_v58 = vpop.f32.mrf.mxu3 }
 0xbdf   : > { %v2695_v61 = vadd.f32 %v2694_v58, %v2581_v47  ;;  %v535_v47 = vld [vmem:[%s4252_s9 + $0x8] sm:$0xff]  ;;  %v534_v58 = vld [vmem:[%s4252_s9] sm:$0xff] }
 0xbe1   : > { %v2740_v60 = vmax.f32 %v2695_v61, 0.0 }
 0xbe3   : > { %v4193_v0 = vpack.c.bf16 %v2740_v60, %v2739_v62  ;;  %v2833_v60 = vld [vmem:[%s4253_s10 + $0x8] sm:$0xff] }
 0xbe6   : > { %v2697_v34 = vpop.f32.mrf.mxu3 }
 0xbe7   : > { %v2698_v8 = vadd.f32 %v2697_v34, %v2583_v50 }
 0xbe9   : > { %v2741_v2 = vmax.f32 %v2698_v8, 0.0 }
 0xbee   : > { %v2700_v29 = vpop.f32.mrf.mxu3 }
 0xbef   : > { %v2701_v59 = vadd.f32 %v2700_v29, %v2585_v17 }
 0xbf1   : > { %v2742_v56 = vmax.f32 %v2701_v59, 0.0 }
 0xbf3   : > { %v2758_v14 = vpack.c.bf16 %v2742_v56, %v2741_v2 }
 0xbf6   : > { %v2703_v26 = vpop.f32.mrf.mxu3 }
 0xbf7   : > { %v2704_v5 = vadd.f32 %v2703_v26, %v2587_v19 }
 0xbf9   : > { %v2743_v42 = vmax.f32 %v2704_v5, 0.0 }
 0xbfe   : > { %v2706_v13 = vpop.f32.mrf.mxu3 }
 0xbff   : > { %v2707_v37 = vadd.f32 %v2706_v13, %v2589_v12 }
 0xc01   : > { %v2744_v21 = vmax.f32 %v2707_v37, 0.0 }
 0xc03   : > { %v2759_v63 = vpack.c.bf16 %v2744_v21, %v2743_v42 }
 0xc06   : > { %v2709_v45 = vpop.f32.mrf.mxu3 }
 0xc07   : > { %v2710_v1 = vadd.f32 %v2709_v45, %v2591_v15  ;;  %v541_v15 = vld [vmem:[%s4252_s9 + $0x38] sm:$0xff] }
 0xc08   : > { %2800 = vmatpush.msrb.mxu2 %v541_v15 }
 0xc09   : > { %v2745_v38 = vmax.f32 %v2710_v1, 0.0 }
 0xc0a   : > { %2801 = vmatpush.msrb.mxu2 %v540_v35 }
 0xc0e   : > { %v2712_v40 = vpop.f32.mrf.mxu3 }
 0xc0f   : > { %v2713_v43 = vadd.f32 %v2712_v40, %v2593_v11  ;;  %v538_v11 = vld [vmem:[%s4252_s9 + $0x20] sm:$0xff] }
 0xc11   : > { %v2746_v46 = vmax.f32 %v2713_v43, 0.0 }
 0xc13   : > { %v2760_v53 = vpack.c.bf16 %v2746_v46, %v2745_v38 }
 0xc16   : > { %v2715_v23 = vpop.f32.mrf.mxu3 }
 0xc1e   : > { %v2718_v22 = vpop.f32.mrf.mxu3 }
 0xc26   : > { %v2721_v7 = vpop.f32.mrf.mxu3 }
 0xc2e   : > { %v2724_v57 = vpop.f32.mrf.mxu3 }
 0xc2f   : > { %v2725_v51 = vadd.f32 %v2724_v57, %v4185_v52  ;;  %v2719_v52 = vadd.f32 %v2718_v22, %v2597_v18  ;;  %v537_v18 = vld [vmem:[%s4252_s9 + $0x18] sm:$0xff] }
 0xc36   : > { %v2727_v36 = vpop.f32.mrf.mxu3 }
 0xc37   : > { %v2728_v54 = vadd.f32 %v2727_v36, %v2603_v55  ;;  %v2750_v55 = vmax.f32 %v2725_v51, 0.0 }
 0xc39   : > { %v2751_v16 = vmax.f32 %v2728_v54, 0.0 }
 0xc3e   : > { %v2730_v48 = vpop.f32.mrf.mxu3 }
 0xc3f   : > { %v2731_v33 = vadd.f32 %v2730_v48, %v4183_v49  ;;  %v539_v49 = vld [vmem:[%s4252_s9 + $0x28] sm:$0xff] }
 0xc40   : > { %2802 = vmatpush.msrb.mxu2 %v539_v49 }
 0xc41   : > { %v2752_v6 = vmax.f32 %v2731_v33, 0.0 }
 0xc42   : > { %2803 = vmatpush.msrb.mxu2 %v538_v11 }
 0xc43   : > { %v2763_v10 = vpack.c.bf16 %v2752_v6, %v2751_v16 }
 0xc44   : > { %2823 = vmatpush.msra.mxu2 %v537_v18 }
 0xc46   : > { %v2733_v41 = vpop.f32.mrf.mxu3  ;;  %2824 = vmatpush.msra.mxu2 %v536_v39 }
 0xc47   : > { %v2734_v25 = vadd.f32 %v2733_v41, %v2607_v28  ;;  %v2722_v28 = vadd.f32 %v2721_v7, %v2599_v9  ;;  %v2748_v9 = vmax.f32 %v2719_v52, 0.0 }
 0xc48   : > { %2825 = vmatpush.msra.mxu2 %v535_v47 }
 0xc49   : > { %v2753_v27 = vmax.f32 %v2734_v25, 0.0  ;;  %v2749_v12 = vmax.f32 %v2722_v28, 0.0 }
 0xc4a   : > { %2826 = vmatpush.msra.mxu2 %v534_v58 }
 0xc4b   : > { %v2762_v50 = vpack.c.bf16 %v2750_v55, %v2749_v12 }
 0xc4e   : > { %v2736_v4 = vpop.f32.mrf.mxu3 }
 0xc4f   : > { %v2737_v44 = vadd.f32 %v2736_v4, %v2609_v3  ;;  %v2716_v3 = vadd.f32 %v2715_v23, %v4189_v32  ;;  %v3292_v32 = vld [vmem:[%s472_s30] sm:$0xff] }
 0xc51   : > { %v2754_v31 = vmax.f32 %v2737_v44, 0.0  ;;  %v2747_v30 = vmax.f32 %v2716_v3, 0.0 }
 0xc53   : > { %v2764_v20 = vpack.c.bf16 %v2754_v31, %v2753_v27  ;;  %v2761_v24 = vpack.c.bf16 %v2748_v9, %v2747_v30 }
 0xc55   : > { %2771 = vmatpush.bf16.msrb.mxu1 %v2764_v20 }
 0xc59   : > { %2772 = vmatpush.bf16.msrb.mxu1 %v2763_v10 }
 0xc5d   : > { %2773 = vmatpush.bf16.msrb.mxu1 %v2762_v50 }
 0xc61   : > { %2774 = vmatpush.bf16.msrb.mxu1 %v2761_v24 }
 0xc65   : > { %2775 = vmatpush.bf16.msrb.mxu1 %v2760_v53 }
 0xc69   : > { %2776 = vmatpush.bf16.msrb.mxu1 %v2759_v63 }
 0xc6d   : > { %2777 = vmatpush.bf16.msrb.mxu1 %v2758_v14 }
 0xc71   : > { %2778 = vmatpush.bf16.msrb.mxu1 %v4193_v0  ;;  %v2832_v0 = vld [vmem:[%s4253_s10] sm:$0xff] }
 0xc74   : > { %2779 = vmatmul.bf16.vlgmr.msrb.gmra.mxu1 %v3292_v32 }
 0xc75   : > { %2852 = vmatpush.msra.mxu1 %v2833_v60 }
 0xc77   : > { %2853 = vmatpush.msra.mxu1 %v2832_v0 }
 0xcf1   : > { %v2780_v61 = vpop.f32.mrf.mxu1 }
 0xcf9   : > { %v2782_v62 = vpop.f32.mrf.mxu1 }
 0xcfa   : > { %3254 = vmatmul.msk.f32.vlgmr.msrb.gmra.mxu2 %vm931_vm1, %v2782_v62 }
 0xd02   : > { %3255 = vmatmul.msk.f32.vlgmr.msra.gmra.mxu2 %vm931_vm1, %v2780_v61 }
 0xd7d   : > { %v2805_v19 = vpop.f32.mrf.mxu2 }
 0xd85   : > { %v2828_v34 = vpop.f32.mrf.mxu2 }
 0xd86   : > { %v2829_v8 = vadd.f32 %v2828_v34, %v2805_v19 }
 0xd88   : > { %v2831_v17 = vmax.f32 %v2829_v8, 0.0 }
 0xd8a   : > { %3256 = vmatmul.msk.f32.vlgmr.msra.gmra.mxu1 %vm2834_vm2, %v2831_v17 }
 0xe07   : > { %v2855_v29 = vpop.f32.mrf.mxu1 }
 0xe08   : > { %2859 = vst.msk [vmem:[%s477_s29] sm:$0xff] %vm2858_vm3, %v2855_v29 }
 0xe09 PF: > { %s21_s17 = sadd.s32 1, %s3340_s17  }
 0xe0a   : > { %p18_p7 = scmp.ge.s32.totalorder %s21_s17, 4  }
 0xe0c   :  { %20 = sbr.rel (!%p18_p7) target bundleno = 1 (0x1), region = 106 }

</bundles_post_ra>
